<compile_context>
chip_gen: v6e
topology: v6e:2x2x1
jax: 0.10.0
libtpu: 0.0.40
codegen_flags: <defaults>
</compile_context>

<pallas_src>
import math
import numpy as np

import jax
import jax.numpy as jnp
from jax.experimental import pallas as pl
from jax.experimental.pallas import tpu as pltpu

# ----------------------- static configuration -----------------------------
PATCH = 8              # VAE spatial down/up factor (8x, like the SD VAE)
IMG_C = 3
LAT_C = 4              # latent channels (unet.config.in_channels)
HIDDEN = 32            # synthetic UNet / text-encoder width
SEQ = 8                # tokenized prompt length
VOCAB = 64
TILE = 4               # args.latent_tiled_size
OVERLAP = 1            # args.latent_tiled_overlap
SCALING = 0.18215      # vae.config.scaling_factor
TIMESTEP = 999

ODIM = IMG_C * PATCH * PATCH        # 192 patch pixels
ODIM_PAD = 256                      # lane-dense padded output width (2 x 128)
PDIM = IMG_C * PATCH * PATCH        # 192 input patch pixels

# DDPM scheduler constants (scaled_linear betas, 1000 train steps, SD default).
# With set_timesteps(1) and t=999 the previous timestep is -1, so
# alpha_prod_prev == 1 and the DDPM step collapses analytically to
#   prev_sample = (sample - sqrt(1 - a_t) * eps) / sqrt(a_t)
_betas = np.linspace(0.00085 ** 0.5, 0.012 ** 0.5, 1000, dtype=np.float32) ** 2
_ac = np.cumprod(1.0 - _betas)
SQRT_AC_T = float(np.sqrt(_ac[TIMESTEP]))
SQRT_1M_AC_T = float(np.sqrt(1.0 - _ac[TIMESTEP]))
INV_SQRT_AC_T = 1.0 / SQRT_AC_T
INV_SCALING = 1.0 / SCALING
INV_SQRT_HIDDEN = 1.0 / math.sqrt(HIDDEN)


# ------------------- static tiling constants (trace time) ------------------
def _build_tiling_constants(hl, wl, tile_size, tile_overlap):
    """Static gather (tile pixels <- latent pixels) and gaussian-weighted
    scatter (latent pixels <- tile pixels) matrices replicating the PyTorch
    tile loop exactly (re-anchoring, replicate-pad, crop), plus the
    precomputed 1/(contributors + 1e-6) normalization vector."""
    hw = hl * wl
    if hl <= tile_size and wl <= tile_size:
        # no-tiling path: identity gather/scatter, no normalization
        eye = np.eye(hw, dtype=np.float32)
        return eye, eye.copy(), np.ones((hw, 1), dtype=np.float32)

    # gaussian tile weights (fully static; replaces the old gaussian kernel)
    yc = np.linspace(-(tile_size - 1) / 2.0, (tile_size - 1) / 2.0, tile_size)
    xc = np.linspace(-(tile_size - 1) / 2.0, (tile_size - 1) / 2.0, tile_size)
    var = (tile_size / 4.0) ** 2
    w2d = np.outer(np.exp(-(yc ** 2) / (2.0 * var)),
                   np.exp(-(xc ** 2) / (2.0 * var)))
    w2d = (w2d / w2d.max()).astype(np.float32)

    stride = max(1, tile_size - tile_overlap)
    num_h = math.ceil(max(1, hl - tile_overlap) / stride)
    num_w = math.ceil(max(1, wl - tile_overlap) / stride)
    tp = tile_size * tile_size
    n_rows = num_h * num_w * tp

    gather = np.zeros((n_rows, hw), dtype=np.float32)
    scatter = np.zeros((hw, n_rows), dtype=np.float32)
    contrib = np.zeros((hw,), dtype=np.float32)

    t = 0
    for row in range(num_h):
        for col in range(num_w):
            y_end = min(row * stride + tile_size, hl)
            x_end = min(col * stride + tile_size, wl)
            y_start = max(0, y_end - tile_size)
            x_start = max(0, x_end - tile_size)
            th = y_end - y_start          # un-padded tile extent
            tw = x_end - x_start
            for ty in range(tile_size):
                for tx in range(tile_size):
                    r = t * tp + ty * tile_size + tx
                    # replicate-pad on the gather side
                    sy = y_start + min(ty, th - 1)
                    sx = x_start + min(tx, tw - 1)
                    gather[r, sy * wl + sx] = 1.0
                    # crop on the scatter side (only real pixels contribute)
                    if ty < th and tx < tw:
                        lp = (y_start + ty) * wl + (x_start + tx)
                        wgt = w2d[ty, tx]
                        scatter[lp, r] = wgt
                        contrib[lp] += wgt
            t += 1

    inv_contrib = (1.0 / (contrib + 1e-6)).reshape(hw, 1).astype(np.float32)
    return gather, scatter, inv_contrib


# ----------------------------- fused Pallas kernel --------------------------
def _fused_forward_kernel(patches_ref, temb_ref, kmat_ref, vmat_ref,
                          gath_ref, scat_ref, vae_enc_ref, w_in_ref, wq_ref,
                          w_out_dec_ref, vae_dec_ref, out_ref):
    f32 = jnp.float32
    bf16 = jnp.bfloat16

    def bdot(a, b):
        # bf16 operands + f32 MXU accumulation (UNet/text-encoder weight_dtype)
        return jnp.dot(a.astype(bf16), b.astype(bf16), preferred_element_type=f32)

    # ---- VAE encode: patchified pixels -> latent channels (scaling folded)
    # TODO(synk): latent_dist.sample() adds random noise; deterministic mean used.
    z = jnp.dot(patches_ref[...], vae_enc_ref[...],
                preferred_element_type=f32)                          # (R, LAT_C)

    # ---- decode of the un-denoised latent term, issued early (off the
    #      dependent-matmul critical path); all DDPM/scaling consts folded
    img_z = jnp.dot(z, vae_dec_ref[...], preferred_element_type=f32)  # (R, 256)

    # ---- gather every tile's pixels into one stacked LHS (static 0/1 matrix,
    #      exact in bf16); all tiles share ONE batched UNet pass
    tiles = bdot(gath_ref[...], z)                                    # (NP, LAT_C)

    # ---- synthetic UNet: in-proj + timestep conditioning + cross-attn (bf16
    #      operands, f32 accumulation)
    h = bdot(tiles, w_in_ref[...]) + temb_ref[...]                    # (NP, HIDDEN)
    q = bdot(h, wq_ref[...])
    s = jax.lax.dot_general(q.astype(bf16), kmat_ref[...],
                            (((1,), (1,)), ((), ())),
                            preferred_element_type=f32) * INV_SQRT_HIDDEN
    s = s - jnp.max(s, axis=-1, keepdims=True)
    p = jnp.exp(s)
    # approx reciprocal (EUP): ~1e-2 rel. error vs exact division; acceptable
    # for the synthetic stand-in, flip approx=False for bit-matching.
    p = p * pl.reciprocal(jnp.sum(p, axis=-1, keepdims=True), approx=True)
    h = h + bdot(p, vmat_ref[...])

    # ---- UNet out-proj fused with VAE decode (W_out_dec = w_out @ vae_dec')
    unet_dec = bdot(h, w_out_dec_ref[...])                            # (NP, 256)

    # ---- gaussian-weighted tile blend + contributor normalization + DDPM eps
    #      term (all folded into scatter'), then final image = z-term - eps-term
    img_eps = jnp.dot(scat_ref[...], unet_dec,
                      preferred_element_type=f32)                     # (R, 256)

    out_ref[...] = jnp.clip(img_z - img_eps, -1.0, 1.0)


def fused_forward(patches, temb, kmat, vmat, gather, scatter, params):
    nchunk, rows, pdim = patches.shape
    shared = (temb, kmat, vmat, gather, scatter,
              params["vae_enc"], params["w_in"], params["wq"],
              params["w_out_dec"], params["vae_dec"])
    in_specs = ([pl.BlockSpec((None, rows, pdim), lambda i: (i, 0, 0))]
                + [pl.BlockSpec(a.shape, lambda i: (0, 0)) for a in shared])
    return pl.pallas_call(
        _fused_forward_kernel,
        out_shape=jax.ShapeDtypeStruct((nchunk, rows, ODIM_PAD), jnp.float32),
        grid=(nchunk,),
        in_specs=in_specs,
        out_specs=pl.BlockSpec((None, rows, ODIM_PAD), lambda i: (i, 0, 0)),
        compiler_params=pltpu.CompilerParams(
            dimension_semantics=("parallel",)),   # chunks shard across TCs (v7x)
    )(patches, *shared)


# ------------------------- jitted forward implementation --------------------
def _forward_impl(lq, emb, temb, params):
    f32 = jnp.float32
    bf16 = jnp.bfloat16
    b, _, H, W = lq.shape
    hl, wl = H // PATCH, W // PATCH
    hw = hl * wl

    # split batch into at most 2 parallel chunks (both TCs on v7x); images
    # inside a chunk are folded into the row axis via block-diagonal matrices
    nchunk = 2 if (b >= 2 and b % 2 == 0) else 1
    gb = b // nchunk

    # static tiling constants, folded at trace time (no gaussian kernel launch,
    # no per-tile launches, no XLA scatter read-modify-writes); the scalar
    # normalization + DDPM sqrt(1-a_t) are folded into scatter'
    tile_size = max(1, TILE)
    tile_overlap = max(0, min(OVERLAP, tile_size - 1))
    g_np, s_np, ic_np = _build_tiling_constants(hl, wl, tile_size, tile_overlap)
    s_np = s_np * ic_np * SQRT_1M_AC_T
    if gb > 1:
        eye = np.eye(gb, dtype=np.float32)
        g_np = np.kron(eye, g_np)
        s_np = np.kron(eye, s_np)
    gather = jnp.asarray(g_np, dtype=bf16)     # 0/1 (+block-diag) -> exact in bf16
    scatter = jnp.asarray(s_np, dtype=f32)

    # batch-invariant prompt-side projections hoisted out of the kernel
    pe = jnp.dot(emb.astype(bf16), params["text_proj"], preferred_element_type=f32)
    kmat = jnp.dot(pe.astype(bf16), params["wk"], preferred_element_type=f32).astype(bf16)
    vmat = jnp.dot(pe.astype(bf16), params["wv"], preferred_element_type=f32).astype(bf16)

    # 8x8 patchify (wrapper-side layout plumbing; feature axis -> lanes)
    x = lq.reshape(b, IMG_C, hl, PATCH, wl, PATCH)
    patches = jnp.transpose(x, (0, 2, 4, 1, 3, 5)).reshape(b, hw, PDIM)
    patches = patches.reshape(nchunk, gb * hw, PDIM)

    out = fused_forward(patches, temb, kmat, vmat, gather, scatter, params)

    # drop lane padding and un-patchify back to NCHW image
    img = out.reshape(b, hw, ODIM_PAD)[:, :, :ODIM]
    img = img.reshape(b, hl, wl, IMG_C, PATCH, PATCH)
    img = jnp.transpose(img, (0, 3, 1, 4, 2, 5)).reshape(
        b, IMG_C, hl * PATCH, wl * PATCH)
    return img


# ----------------------------- model wrapper -------------------------------
class OSEDiffPallas:
    """Synthetic, deterministic stand-in for OSEDiff_test.forward."""
    # TODO(synk): pretrained CLIP/UNet/VAE + LoRA checkpoint loading have no
    # Pallas equivalent; they are replaced by small deterministic linear /
    # cross-attention blocks with the same dataflow.

    def __init__(self, key):
        ks = jax.random.split(key, 9)
        s = 0.1
        f32 = jnp.float32
        bf16 = jnp.bfloat16
        tok_emb = jax.random.normal(ks[0], (VOCAB, HIDDEN), f32) * s
        text_proj = jax.random.normal(ks[1], (HIDDEN, HIDDEN), f32) * s
        vae_enc = jax.random.normal(ks[2], (PDIM, LAT_C), f32) * s
        vae_dec = jax.random.normal(ks[3], (LAT_C, ODIM), f32) * s
        w_in = jax.random.normal(ks[4], (LAT_C, HIDDEN), f32) * s
        wq = jax.random.normal(ks[5], (HIDDEN, HIDDEN), f32) * s
        wk = jax.random.normal(ks[6], (HIDDEN, HIDDEN), f32) * s
        wv = jax.random.normal(ks[7], (HIDDEN, HIDDEN), f32) * s
        w_out = jax.random.normal(ks[8], (HIDDEN, LAT_C), f32) * s

        # trace-time constant folding:
        #   vae_enc' = vae_enc * scaling_factor
        #   vae_dec' = vae_dec / sqrt(a_t) / scaling_factor, zero-padded to 256
        #   W_out_dec = w_out @ vae_dec'  (UNet out-proj fused with decode)
        vae_dec_pad = jnp.zeros((LAT_C, ODIM_PAD), f32).at[:, :ODIM].set(
            vae_dec * (INV_SQRT_AC_T * INV_SCALING))
        w_out_dec = jnp.dot(w_out, vae_dec_pad).astype(bf16)

        self.params = {
            "tok_emb": tok_emb,                          # f32 (embedding lookup)
            "text_proj": text_proj.astype(bf16),         # bf16 weight_dtype path
            "wk": wk.astype(bf16),
            "wv": wv.astype(bf16),
            "wq": wq.astype(bf16),
            "w_in": w_in.astype(bf16),
            "vae_enc": vae_enc * SCALING,                # f32 VAE path
            "vae_dec": vae_dec_pad,                      # f32 VAE path (padded)
            "w_out_dec": w_out_dec,                      # bf16 fused out-proj+decode
        }
        # sinusoidal timestep embedding for t = 999 (fixed, like self.timesteps)
        half = HIDDEN // 2
        freqs = jnp.exp(-math.log(10000.0) * jnp.arange(half) / half)
        ang = TIMESTEP * freqs
        self.temb = jnp.concatenate(
            [jnp.sin(ang), jnp.cos(ang)])[None, :].astype(f32)       # (1,HIDDEN)
        self._fwd = jax.jit(_forward_impl)

    # --- text encoder front-end (synthetic tokenizer + embedding lookup) ----
    def encode_prompt(self, prompt):
        ids = [ord(c) % VOCAB for c in prompt[:SEQ]]
        ids = ids + [0] * (SEQ - len(ids))
        return jnp.take(self.params["tok_emb"], jnp.array(ids, jnp.int32), axis=0)

    # --- forward, mirroring OSEDiff_test.forward -----------------------------
    def forward(self, lq, prompt):
        emb = self.encode_prompt(prompt)
        return self._fwd(lq, emb, self.temb, self.params)


# ---------------------------------- main ------------------------------------
if __name__ == "__main__":
    key = jax.random.PRNGKey(0)
    k_model, k_data = jax.random.split(key)
    model = OSEDiffPallas(k_model)

    # lq image: batch=2, 3 channels, 64x64 -> latent 2x4x8x8 (> tile 4 => tiled
    # path); batch=2 -> two parallel grid chunks (both TensorCores on v7x)
    lq = jax.random.uniform(k_data, (2, 3, 64, 64), jnp.float32,
                            minval=-1.0, maxval=1.0)
    prompt = "a photo"

    out = model.forward(lq, prompt)
    out = jax.block_until_ready(out)
    assert out.shape == (2, 3, 64, 64)
    assert bool(jnp.all(jnp.isfinite(out)))
    assert float(jnp.max(jnp.abs(out))) <= 1.0 + 1e-6
    print("KERNEL_OK")
</pallas_src>

<mosaic_0001>
module attributes {stable_mosaic.version = 11 : i64} {
  func.func @_fused_forward_kernel(%arg0: i32, %arg1: memref<1x64x192xf32, #tpu.memory_space<vmem>>, %arg2: memref<1x32xf32, #tpu.memory_space<vmem>>, %arg3: memref<8x32xbf16, #tpu.memory_space<vmem>>, %arg4: memref<8x32xbf16, #tpu.memory_space<vmem>>, %arg5: memref<144x64xbf16, #tpu.memory_space<vmem>>, %arg6: memref<64x144xf32, #tpu.memory_space<vmem>>, %arg7: memref<192x4xf32, #tpu.memory_space<vmem>>, %arg8: memref<4x32xbf16, #tpu.memory_space<vmem>>, %arg9: memref<32x32xbf16, #tpu.memory_space<vmem>>, %arg10: memref<32x256xbf16, #tpu.memory_space<vmem>>, %arg11: memref<4x256xf32, #tpu.memory_space<vmem>>, %arg12: memref<1x64x256xf32, #tpu.memory_space<vmem>>) attributes {dimension_semantics = [#tpu.dimension_semantics<parallel>], iteration_bounds = array<i64: 2>, scalar_prefetch = 0 : i64, scratch_operands = 0 : i64, tpu.core_type = #tpu.core_type<tc>, window_params = [{transform_indices = @transform_0, window_bounds = array<i64: 1, 64, 192>}, {pipeline_mode = #tpu.pipeline_mode<synchronous>, transform_indices = @transform_1, window_bounds = array<i64: 1, 32>}, {pipeline_mode = #tpu.pipeline_mode<synchronous>, transform_indices = @transform_2, window_bounds = array<i64: 8, 32>}, {pipeline_mode = #tpu.pipeline_mode<synchronous>, transform_indices = @transform_3, window_bounds = array<i64: 8, 32>}, {pipeline_mode = #tpu.pipeline_mode<synchronous>, transform_indices = @transform_4, window_bounds = array<i64: 144, 64>}, {pipeline_mode = #tpu.pipeline_mode<synchronous>, transform_indices = @transform_5, window_bounds = array<i64: 64, 144>}, {pipeline_mode = #tpu.pipeline_mode<synchronous>, transform_indices = @transform_6, window_bounds = array<i64: 192, 4>}, {pipeline_mode = #tpu.pipeline_mode<synchronous>, transform_indices = @transform_7, window_bounds = array<i64: 4, 32>}, {pipeline_mode = #tpu.pipeline_mode<synchronous>, transform_indices = @transform_8, window_bounds = array<i64: 32, 32>}, {pipeline_mode = #tpu.pipeline_mode<synchronous>, transform_indices = @transform_9, window_bounds = array<i64: 32, 256>}, {pipeline_mode = #tpu.pipeline_mode<synchronous>, transform_indices = @transform_10, window_bounds = array<i64: 4, 256>}, {transform_indices = @transform_11, window_bounds = array<i64: 1, 64, 256>}]} {
    %c0 = arith.constant 0 : index
    %c0_0 = arith.constant 0 : index
    %c0_1 = arith.constant 0 : index
    %0 = vector.load %arg1[%c0, %c0_0, %c0_1] : memref<1x64x192xf32, #tpu.memory_space<vmem>>, vector<1x64x192xf32>
    %1 = vector.shape_cast %0 : vector<1x64x192xf32> to vector<64x192xf32>
    %c0_2 = arith.constant 0 : index
    %c0_3 = arith.constant 0 : index
    %2 = vector.load %arg7[%c0_2, %c0_3] : memref<192x4xf32, #tpu.memory_space<vmem>>, vector<192x4xf32>
    %cst = arith.constant dense<0.000000e+00> : vector<64x4xf32>
    %3 = tpu.matmul %1, %2, %cst {dimension_numbers = #tpu.dot_dimension_numbers<[1], [0], [0], [1], [0, 0, 1, 1], [], []>} : vector<64x192xf32>, vector<192x4xf32>, vector<64x4xf32> -> vector<64x4xf32>
    %c0_4 = arith.constant 0 : index
    %c0_5 = arith.constant 0 : index
    %4 = vector.load %arg11[%c0_4, %c0_5] : memref<4x256xf32, #tpu.memory_space<vmem>>, vector<4x256xf32>
    %cst_6 = arith.constant dense<0.000000e+00> : vector<64x256xf32>
    %5 = tpu.matmul %3, %4, %cst_6 {dimension_numbers = #tpu.dot_dimension_numbers<[1], [0], [0], [1], [0, 0, 1, 1], [], []>} : vector<64x4xf32>, vector<4x256xf32>, vector<64x256xf32> -> vector<64x256xf32>
    %c0_7 = arith.constant 0 : index
    %c0_8 = arith.constant 0 : index
    %6 = vector.load %arg5[%c0_7, %c0_8] : memref<144x64xbf16, #tpu.memory_space<vmem>>, vector<144x64xbf16>
    %7 = arith.truncf %3 : vector<64x4xf32> to vector<64x4xbf16>
    %cst_9 = arith.constant dense<0.000000e+00> : vector<144x4xf32>
    %8 = tpu.matmul %6, %7, %cst_9 {dimension_numbers = #tpu.dot_dimension_numbers<[1], [0], [0], [1], [0, 0, 1, 1], [], []>} : vector<144x64xbf16>, vector<64x4xbf16>, vector<144x4xf32> -> vector<144x4xf32>
    %c0_10 = arith.constant 0 : index
    %c0_11 = arith.constant 0 : index
    %9 = vector.load %arg8[%c0_10, %c0_11] : memref<4x32xbf16, #tpu.memory_space<vmem>>, vector<4x32xbf16>
    %10 = arith.truncf %8 : vector<144x4xf32> to vector<144x4xbf16>
    %cst_12 = arith.constant dense<0.000000e+00> : vector<144x32xf32>
    %11 = tpu.matmul %10, %9, %cst_12 {dimension_numbers = #tpu.dot_dimension_numbers<[1], [0], [0], [1], [0, 0, 1, 1], [], []>} : vector<144x4xbf16>, vector<4x32xbf16>, vector<144x32xf32> -> vector<144x32xf32>
    %c0_13 = arith.constant 0 : index
    %c0_14 = arith.constant 0 : index
    %12 = vector.load %arg2[%c0_13, %c0_14] : memref<1x32xf32, #tpu.memory_space<vmem>>, vector<1x32xf32>
    %13 = vector.broadcast %12 : vector<1x32xf32> to vector<144x32xf32>
    %14 = arith.addf %11, %13 : vector<144x32xf32>
    %c0_15 = arith.constant 0 : index
    %c0_16 = arith.constant 0 : index
    %15 = vector.load %arg9[%c0_15, %c0_16] : memref<32x32xbf16, #tpu.memory_space<vmem>>, vector<32x32xbf16>
    %16 = arith.truncf %14 : vector<144x32xf32> to vector<144x32xbf16>
    %cst_17 = arith.constant dense<0.000000e+00> : vector<144x32xf32>
    %17 = tpu.matmul %16, %15, %cst_17 {dimension_numbers = #tpu.dot_dimension_numbers<[1], [0], [0], [1], [0, 0, 1, 1], [], []>} : vector<144x32xbf16>, vector<32x32xbf16>, vector<144x32xf32> -> vector<144x32xf32>
    %18 = arith.truncf %17 : vector<144x32xf32> to vector<144x32xbf16>
    %c0_18 = arith.constant 0 : index
    %c0_19 = arith.constant 0 : index
    %19 = vector.load %arg3[%c0_18, %c0_19] : memref<8x32xbf16, #tpu.memory_space<vmem>>, vector<8x32xbf16>
    %cst_20 = arith.constant dense<0.000000e+00> : vector<144x8xf32>
    %20 = tpu.matmul %18, %19, %cst_20 {dimension_numbers = #tpu.dot_dimension_numbers<[1], [1], [0], [0], [0, 0, 1, 0], [], []>} : vector<144x32xbf16>, vector<8x32xbf16>, vector<144x8xf32> -> vector<144x8xf32>
    %cst_21 = arith.constant 0.176776692 : f32
    %21 = vector.broadcast %cst_21 : f32 to vector<144x8xf32>
    %22 = arith.mulf %20, %21 : vector<144x8xf32>
    %cst_22 = arith.constant dense<0xFF800000> : vector<144xf32>
    %23 = vector.multi_reduction <maximumf>, %22, %cst_22 [1] : vector<144x8xf32> to vector<144xf32>
    %24 = vector.shape_cast %23 : vector<144xf32> to vector<144x1xf32>
    %25 = vector.broadcast %24 : vector<144x1xf32> to vector<144x8xf32>
    %26 = arith.subf %22, %25 : vector<144x8xf32>
    %27 = math.exp %26 : vector<144x8xf32>
    %cst_23 = arith.constant dense<0.000000e+00> : vector<144xf32>
    %28 = vector.multi_reduction <add>, %27, %cst_23 [1] : vector<144x8xf32> to vector<144xf32>
    %29 = vector.shape_cast %28 : vector<144xf32> to vector<144x1xf32>
    %30 = tpu.reciprocal %29 {approx = true} : vector<144x1xf32> -> vector<144x1xf32>
    %31 = vector.broadcast %30 : vector<144x1xf32> to vector<144x8xf32>
    %32 = arith.mulf %27, %31 : vector<144x8xf32>
    %c0_24 = arith.constant 0 : index
    %c0_25 = arith.constant 0 : index
    %33 = vector.load %arg4[%c0_24, %c0_25] : memref<8x32xbf16, #tpu.memory_space<vmem>>, vector<8x32xbf16>
    %34 = arith.truncf %32 : vector<144x8xf32> to vector<144x8xbf16>
    %cst_26 = arith.constant dense<0.000000e+00> : vector<144x32xf32>
    %35 = tpu.matmul %34, %33, %cst_26 {dimension_numbers = #tpu.dot_dimension_numbers<[1], [0], [0], [1], [0, 0, 1, 1], [], []>} : vector<144x8xbf16>, vector<8x32xbf16>, vector<144x32xf32> -> vector<144x32xf32>
    %36 = arith.addf %14, %35 : vector<144x32xf32>
    %c0_27 = arith.constant 0 : index
    %c0_28 = arith.constant 0 : index
    %37 = vector.load %arg10[%c0_27, %c0_28] : memref<32x256xbf16, #tpu.memory_space<vmem>>, vector<32x256xbf16>
    %38 = arith.truncf %36 : vector<144x32xf32> to vector<144x32xbf16>
    %cst_29 = arith.constant dense<0.000000e+00> : vector<144x256xf32>
    %39 = tpu.matmul %38, %37, %cst_29 {dimension_numbers = #tpu.dot_dimension_numbers<[1], [0], [0], [1], [0, 0, 1, 1], [], []>} : vector<144x32xbf16>, vector<32x256xbf16>, vector<144x256xf32> -> vector<144x256xf32>
    %c0_30 = arith.constant 0 : index
    %c0_31 = arith.constant 0 : index
    %40 = vector.load %arg6[%c0_30, %c0_31] : memref<64x144xf32, #tpu.memory_space<vmem>>, vector<64x144xf32>
    %cst_32 = arith.constant dense<0.000000e+00> : vector<64x256xf32>
    %41 = tpu.matmul %40, %39, %cst_32 {dimension_numbers = #tpu.dot_dimension_numbers<[1], [0], [0], [1], [0, 0, 1, 1], [], []>} : vector<64x144xf32>, vector<144x256xf32>, vector<64x256xf32> -> vector<64x256xf32>
    %42 = arith.subf %5, %41 : vector<64x256xf32>
    %cst_33 = arith.constant -1.000000e+00 : f32
    %cst_34 = arith.constant 1.000000e+00 : f32
    %43 = vector.broadcast %cst_33 : f32 to vector<64x256xf32>
    %44 = arith.maximumf %43, %42 : vector<64x256xf32>
    %45 = vector.broadcast %cst_34 : f32 to vector<64x256xf32>
    %46 = arith.minimumf %45, %44 : vector<64x256xf32>
    %c0_35 = arith.constant 0 : index
    %c0_36 = arith.constant 0 : index
    %c0_37 = arith.constant 0 : index
    %47 = vector.load %arg12[%c0_35, %c0_36, %c0_37] : memref<1x64x256xf32, #tpu.memory_space<vmem>>, vector<1x64x256xf32>
    %48 = vector.shape_cast %47 : vector<1x64x256xf32> to vector<64x256xf32>
    %49 = vector.shape_cast %46 : vector<64x256xf32> to vector<1x64x256xf32>
    tpu.vector_store %arg12[%c0_35, %c0_36, %c0_37], %49 {strides = array<i32>} : memref<1x64x256xf32, #tpu.memory_space<vmem>>, vector<1x64x256xf32>,
    return
  }
  func.func @transform_0(%arg0: i32) -> (i32, i32, i32) {
    %c0_i32 = arith.constant 0 : i32
    %c0_i32_0 = arith.constant 0 : i32
    %c0_i32_1 = arith.constant 0 : i32
    return %arg0, %c0_i32, %c0_i32_0 : i32, i32, i32
  }
  func.func @transform_1(%arg0: i32) -> (i32, i32) {
    %c0_i32 = arith.constant 0 : i32
    %c0_i32_0 = arith.constant 0 : i32
    %c0_i32_1 = arith.constant 0 : i32
    return %c0_i32, %c0_i32_0 : i32, i32
  }
  func.func @transform_2(%arg0: i32) -> (i32, i32) {
    %c0_i32 = arith.constant 0 : i32
    %c0_i32_0 = arith.constant 0 : i32
    %c0_i32_1 = arith.constant 0 : i32
    return %c0_i32, %c0_i32_0 : i32, i32
  }
  func.func @transform_3(%arg0: i32) -> (i32, i32) {
    %c0_i32 = arith.constant 0 : i32
    %c0_i32_0 = arith.constant 0 : i32
    %c0_i32_1 = arith.constant 0 : i32
    return %c0_i32, %c0_i32_0 : i32, i32
  }
  func.func @transform_4(%arg0: i32) -> (i32, i32) {
    %c0_i32 = arith.constant 0 : i32
    %c0_i32_0 = arith.constant 0 : i32
    %c0_i32_1 = arith.constant 0 : i32
    return %c0_i32, %c0_i32_0 : i32, i32
  }
  func.func @transform_5(%arg0: i32) -> (i32, i32) {
    %c0_i32 = arith.constant 0 : i32
    %c0_i32_0 = arith.constant 0 : i32
    %c0_i32_1 = arith.constant 0 : i32
    return %c0_i32, %c0_i32_0 : i32, i32
  }
  func.func @transform_6(%arg0: i32) -> (i32, i32) {
    %c0_i32 = arith.constant 0 : i32
    %c0_i32_0 = arith.constant 0 : i32
    %c0_i32_1 = arith.constant 0 : i32
    return %c0_i32, %c0_i32_0 : i32, i32
  }
  func.func @transform_7(%arg0: i32) -> (i32, i32) {
    %c0_i32 = arith.constant 0 : i32
    %c0_i32_0 = arith.constant 0 : i32
    %c0_i32_1 = arith.constant 0 : i32
    return %c0_i32, %c0_i32_0 : i32, i32
  }
  func.func @transform_8(%arg0: i32) -> (i32, i32) {
    %c0_i32 = arith.constant 0 : i32
    %c0_i32_0 = arith.constant 0 : i32
    %c0_i32_1 = arith.constant 0 : i32
    return %c0_i32, %c0_i32_0 : i32, i32
  }
  func.func @transform_9(%arg0: i32) -> (i32, i32) {
    %c0_i32 = arith.constant 0 : i32
    %c0_i32_0 = arith.constant 0 : i32
    %c0_i32_1 = arith.constant 0 : i32
    return %c0_i32, %c0_i32_0 : i32, i32
  }
  func.func @transform_10(%arg0: i32) -> (i32, i32) {
    %c0_i32 = arith.constant 0 : i32
    %c0_i32_0 = arith.constant 0 : i32
    %c0_i32_1 = arith.constant 0 : i32
    return %c0_i32, %c0_i32_0 : i32, i32
  }
  func.func @transform_11(%arg0: i32) -> (i32, i32, i32) {
    %c0_i32 = arith.constant 0 : i32
    %c0_i32_0 = arith.constant 0 : i32
    %c0_i32_1 = arith.constant 0 : i32
    return %arg0, %c0_i32, %c0_i32_0 : i32, i32, i32
  }
}

</mosaic_0001>

<bundles_post_ra>
// kernel: _forward_impl.1
= control target key start
LH: loop header
LB: loop body
LE: loop exit
PB: predicated region body
PF: predicated region fallthrough
CT: control target
= control target key end

     0   :  { %s2744_s17 = smov 0   ;;  %s3532_s0 = inlined_call_operand.vmem [shape: f32[2,64,192], index: 0, kind: input, shape index: {}]   ;;  %s3533_s1 = inlined_call_operand.vmem [shape: f32[1,32], index: 1, kind: input, shape index: {}]   ;;  %s3534_s2 = inlined_call_operand.vmem [shape: bf16[8,32], index: 2, kind: input, shape index: {}]   ;;  %s3535_s3 = inlined_call_operand.vmem [shape: bf16[8,32], index: 3, kind: input, shape index: {}]   ;;  %s3536_s4 = inlined_call_operand.vmem [shape: bf16[144,64], index: 4, kind: input, shape index: {}]   ;;  %s3537_s5 = inlined_call_operand.vmem [shape: f32[64,144], index: 5, kind: input, shape index: {}]   ;;  %s3538_s6 = inlined_call_operand.vmem [shape: f32[192,4], index: 6, kind: input, shape index: {}]   ;;  %s3539_s7 = inlined_call_operand.vmem [shape: bf16[4,32], index: 7, kind: input, shape index: {}]   ;;  %s3540_s8 = inlined_call_operand.vmem [shape: bf16[32,32], index: 8, kind: input, shape index: {}]   ;;  %s3541_s9 = inlined_call_operand.vmem [shape: bf16[32,256], index: 9, kind: input, shape index: {}]   ;;  %s3542_s10 = inlined_call_operand.vmem [shape: f32[4,256], index: 10, kind: input, shape index: {}]   ;;  %s3543_s11 = inlined_call_operand.vmem [shape: f32[2,64,256], index: 11, kind: output, shape index: {}]  }
   0x1 LB: > { %s2195_s18 = sadd.s32 4294967295, %s2679_s17   ;;  %p2199_p0 = scmp.ge.s32.totalorder %s2679_s17, 1  ;;  %s2679_s17 = sphi %s2744_s17, %s21_s17  }
   0x2   : > { %p337_p1 = scmp.lt.s32.totalorder %s2679_s17, 3 }
   0x4   : > { %p338_p2 = pnand %p2199_p0, %p337_p1 }
   0x6   : > { %341 = sbr.rel (%p338_p2) target bundleno = 2130 (0x852), region = 64 }
   0xb   : > { %v419_v0 = vld [vmem:[%s3538_s6 + $0x78] sm:$0xff]  ;;  %p377_p3 = scmp.lt.s32.totalorder %s2195_s18, 1  ;;  %v3544_v1 = vmov 0.0   ;;  %v418_v2 = vld [vmem:[%s3538_s6 + $0x70] sm:$0xff]  ;;  %v417_v3 = vld [vmem:[%s3538_s6 + $0x68] sm:$0xff]  ;;  %vm428_vm0 = vcmask 523264  }
   0xc   : > { %453 = vmatprep.subr.mxu0 %v3544_v1  ;;  %655 = vmatprep.mubr.f32.mxu1 %v3544_v1  ;;  %v416_v4 = vld [vmem:[%s3538_s6 + $0x60] sm:$0xff]  ;;  %v415_v5 = vld [vmem:[%s3538_s6 + $0x58] sm:$0xff]  ;;  %v414_v7 = vld [vmem:[%s3538_s6 + $0x50] sm:$0xff]  ;;  %vm586_vm1 = vcmask 1043456   ;;  %vm2682_vm2 = vmmov 0   ;;  %vm561_vm3 = vcmask 31744  }
   0xd   : > { %454 = vmatpush1.msra.mxu0 %v419_v0  ;;  %s3550_s18 = smov (!%p377_p3, %s2195_s18), 1  ;;  %v413_v8 = vld [vmem:[%s3538_s6 + $0x48] sm:$0xff]  ;;  %v412_v9 = vld [vmem:[%s3538_s6 + $0x40] sm:$0xff]  ;;  %v411_v10 = vld [vmem:[%s3538_s6 + $0x38] sm:$0xff]  ;;  %vm947_vm4 = vcmask 1041408   ;;  %vm1081_vm5 = vcmask 261120  }
   0xe   : > { %455 = vmatprep.subr.mxu0 %v3544_v1  ;;  %s2318_s25 = sshll.u32 %s3550_s18, 7  ;;  %v558_v11 = vld [vmem:[%s3542_s10] sm:$0xff]  ;;  %v410_v13 = vld [vmem:[%s3538_s6 + $0x30] sm:$0xff]  ;;  %v409_v14 = vld [vmem:[%s3538_s6 + $0x28] sm:$0xff]  ;;  %vm1377_vm6 = vcmask 64512   ;;  %vm1938_vm7 = vcmask 130048  }
   0xf   : > { %456 = vmatpush1.msra.mxu0 %v418_v2  ;;  %s2776_s30 = scalar_lea.vmem %s3532_s0, %s2318_s25  ;;  %v560_v12 = vcombine.high %v558_v11, %v558_v11  ;;  %v408_v15 = vld [vmem:[%s3538_s6 + $0x20] sm:$0xff]  ;;  %v407_v16 = vld [vmem:[%s3538_s6 + $0x18] sm:$0xff]  ;;  %v406_v17 = vld [vmem:[%s3538_s6 + $0x10] sm:$0xff]  ;;  %s3496_s16 = scalar_lea.vmem %s3543_s11, %s2318_s25 }
  0x10   : > { %457 = vmatprep.subr.mxu0 %v3544_v1  ;;  %v389_v6 = vld [vmem:[%s2776_s30 + $0x8] sm:$0xff]  ;;  %v404_v19 = vld [vmem:[%s3538_s6] sm:$0xff]  ;;  %v427_v20 = vld [vmem:[%s3538_s6 + $0xb8] sm:$0xff] }
  0x11   : > { %458 = vmatpush1.msra.mxu0 %v417_v3  ;;  %2204 = vmatprep.mubr.msk.f32.mxu0 %vm428_vm0, %v389_v6  ;;  %v405_v18 = vld [vmem:[%s3538_s6 + $0x8] sm:$0xff]  ;;  %v426_v21 = vld [vmem:[%s3538_s6 + $0xb0] sm:$0xff]  ;;  %v424_v23 = vld [vmem:[%s3538_s6 + $0xa0] sm:$0xff] }
  0x12   : > { %459 = vmatprep.subr.mxu0 %v3544_v1  ;;  %2212 = vmatprep.subr.msk.mxu1 %vm586_vm1, %v560_v12  ;;  %v425_v22 = vld [vmem:[%s3538_s6 + $0xa8] sm:$0xff]  ;;  %v423_v24 = vld [vmem:[%s3538_s6 + $0x98] sm:$0xff]  ;;  %v422_v25 = vld [vmem:[%s3538_s6 + $0x90] sm:$0xff] }
  0x13   : > { %460 = vmatpush1.msra.mxu0 %v416_v4  ;;  %2213 = vmatpush1.msk.msra.mxu1 %vm586_vm1, %v558_v11  ;;  %v421_v26 = vld [vmem:[%s3538_s6 + $0x88] sm:$0xff]  ;;  %v420_v27 = vld [vmem:[%s3538_s6 + $0x80] sm:$0xff]  ;;  %v391_v29 = vld [vmem:[%s2776_s30 + $0x18] sm:$0xff] }
  0x14   : > { %461 = vmatprep.subr.mxu0 %v3544_v1  ;;  %2374 = vmatprep.subr.bf16.mxu1 %v3544_v1  ;;  %v388_v28 = vld [vmem:[%s2776_s30] sm:$0xff]  ;;  %v390_v30 = vld [vmem:[%s2776_s30 + $0x10] sm:$0xff]  ;;  %v393_v31 = vld [vmem:[%s2776_s30 + $0x28] sm:$0xff] }
  0x15   : > { %462 = vmatpush1.msra.mxu0 %v415_v5  ;;  %v392_v32 = vld [vmem:[%s2776_s30 + $0x20] sm:$0xff]  ;;  %v395_v33 = vld [vmem:[%s2776_s30 + $0x38] sm:$0xff]  ;;  %v394_v34 = vld [vmem:[%s2776_s30 + $0x30] sm:$0xff] }
  0x16   : > { %463 = vmatprep.subr.mxu0 %v3544_v1  ;;  %v397_v35 = vld [vmem:[%s2776_s30 + $0x48] sm:$0xff]  ;;  %v396_v36 = vld [vmem:[%s2776_s30 + $0x40] sm:$0xff]  ;;  %v399_v37 = vld [vmem:[%s2776_s30 + $0x58] sm:$0xff] }
  0x17   : > { %464 = vmatpush1.msra.mxu0 %v414_v7  ;;  %v398_v38 = vld [vmem:[%s2776_s30 + $0x50] sm:$0xff]  ;;  %v401_v39 = vld [vmem:[%s2776_s30 + $0x68] sm:$0xff]  ;;  %v400_v40 = vld [vmem:[%s2776_s30 + $0x60] sm:$0xff] }
  0x18   : > { %465 = vmatprep.subr.mxu0 %v3544_v1  ;;  %v403_v41 = vld [vmem:[%s2776_s30 + $0x78] sm:$0xff]  ;;  %v402_v42 = vld [vmem:[%s2776_s30 + $0x70] sm:$0xff]  ;;  %v2584_v63 = vld [vmem:[%s3536_s4] sm:$0xff]  }
  0x19   : > { %466 = vmatpush1.msra.mxu0 %v413_v8  ;;  %v2585_v0 = vld [vmem:[%s3536_s4 + $0x8] sm:$0xff]   ;;  %v2586_v2 = vld [vmem:[%s3536_s4 + $0x10] sm:$0xff]   ;;  %v2587_v3 = vld [vmem:[%s3536_s4 + $0x18] sm:$0xff]  }
  0x1a   : > { %467 = vmatprep.subr.mxu0 %v3544_v1  ;;  %v2588_v4 = vld [vmem:[%s3536_s4 + $0x20] sm:$0xff]   ;;  %v2589_v5 = vld [vmem:[%s3536_s4 + $0x28] sm:$0xff]   ;;  %v2590_v6 = vld [vmem:[%s3536_s4 + $0x30] sm:$0xff]  }
  0x1b   : > { %468 = vmatpush1.msra.mxu0 %v412_v9  ;;  %v2591_v7 = vld [vmem:[%s3536_s4 + $0x38] sm:$0xff]   ;;  %v2592_v8 = vld [vmem:[%s3536_s4 + $0x40] sm:$0xff]   ;;  %v2593_v11 = vld [vmem:[%s3540_s8 + $0x8] sm:$0xff]  }
  0x1c   : > { %469 = vmatprep.subr.mxu0 %v3544_v1  ;;  %v903_v9 = vld [vmem:[%s3539_s7] sm:$0x3] }
  0x1d   : > { %470 = vmatpush1.msra.mxu0 %v411_v10  ;;  %v949_v10 = vsel %vm947_vm4, %v903_v9, 0 }
  0x1e   : > { %471 = vmatprep.subr.mxu0 %v3544_v1 }
  0x1f   : > { %472 = vmatpush1.msra.mxu0 %v410_v13 }
  0x20   : > { %473 = vmatprep.subr.mxu0 %v3544_v1 }
  0x21   : > { %474 = vmatpush1.msra.mxu0 %v409_v14 }
  0x22   : > { %475 = vmatprep.subr.mxu0 %v3544_v1 }
  0x23   : > { %476 = vmatpush1.msra.mxu0 %v408_v15 }
  0x24   : > { %477 = vmatprep.subr.mxu0 %v3544_v1 }
  0x25   : > { %478 = vmatpush1.msra.mxu0 %v407_v16 }
  0x26   : > { %479 = vmatprep.subr.mxu0 %v3544_v1 }
  0x27   : > { %480 = vmatpush1.msra.mxu0 %v406_v17 }
  0x28   : > { %481 = vmatprep.subr.mxu0 %v3544_v1 }
  0x29   : > { %482 = vmatpush1.msra.mxu0 %v405_v18 }
  0x2a   : > { %483 = vmatprep.subr.mxu0 %v3544_v1 }
  0x2b   : > { %484 = vmatpush1.msra.mxu0 %v404_v19 }
  0x2c   : > { %501 = vmatprep.subr.mxu0 %v3544_v1 }
  0x2d   : > { %502 = vmatpush2.msra.mxu0 %v427_v20 }
  0x2e   : > { %503 = vmatprep.subr.mxu0 %v3544_v1 }
  0x2f   : > { %504 = vmatpush2.msra.mxu0 %v426_v21 }
  0x30   : > { %505 = vmatprep.subr.mxu0 %v3544_v1 }
  0x31   : > { %506 = vmatpush2.msra.mxu0 %v425_v22 }
  0x32   : > { %507 = vmatprep.subr.mxu0 %v3544_v1 }
  0x33   : > { %508 = vmatpush2.msra.mxu0 %v424_v23 }
  0x34   : > { %509 = vmatprep.subr.mxu0 %v3544_v1 }
  0x35   : > { %510 = vmatpush2.msra.mxu0 %v423_v24 }
  0x36   : > { %511 = vmatprep.subr.mxu0 %v3544_v1 }
  0x37   : > { %512 = vmatpush2.msra.mxu0 %v422_v25 }
  0x38   : > { %513 = vmatprep.subr.mxu0 %v3544_v1 }
  0x39   : > { %514 = vmatpush2.msra.mxu0 %v421_v26 }
  0x3a   : > { %515 = vmatprep.subr.mxu0 %v3544_v1 }
  0x3b   : > { %516 = vmatpush2.msra.mxu0 %v420_v27 }
  0x3c   : > { %518 = vmatmul.mubr.f32.vlgmr.msra.gmra.mxu0 %v388_v28  ;;  %2418 = vmatprep.subr.bf16.mxu0 %v3544_v1 }
  0x3d   : > { %2205 = vmatprep.mubr.msk.f32.mxu0 %vm428_vm0, %v391_v29  ;;  %2419 = vmatpush3.bf16.msra.mxu0 %v949_v10  ;;  %v2594_v10 = vld [vmem:[%s3540_s8] sm:$0xff]  }
  0x3e   : > { %2496 = vmatprep.subr.bf16.mxu0 %v3544_v1 }
  0x40   : > { %523 = vmatmul.mubr.f32.gmra.mxu0 %v390_v30 }
  0x41   : > { %2206 = vmatprep.mubr.msk.f32.mxu0 %vm428_vm0, %v393_v31 }
  0x44   : > { %528 = vmatmul.mubr.f32.gmra.mxu0 %v392_v32 }
  0x45   : > { %2207 = vmatprep.mubr.msk.f32.mxu0 %vm428_vm0, %v395_v33 }
  0x48   : > { %533 = vmatmul.mubr.f32.gmra.mxu0 %v394_v34 }
  0x49   : > { %2208 = vmatprep.mubr.msk.f32.mxu0 %vm428_vm0, %v397_v35 }
  0x4c   : > { %538 = vmatmul.mubr.f32.gmra.mxu0 %v396_v36 }
  0x4d   : > { %2209 = vmatprep.mubr.msk.f32.mxu0 %vm428_vm0, %v399_v37 }
  0x50   : > { %543 = vmatmul.mubr.f32.gmra.mxu0 %v398_v38 }
  0x51   : > { %2210 = vmatprep.mubr.msk.f32.mxu0 %vm428_vm0, %v401_v39 }
  0x54   : > { %548 = vmatmul.mubr.f32.gmra.mxu0 %v400_v40 }
  0x55   : > { %2211 = vmatprep.mubr.msk.f32.mxu0 %vm428_vm0, %v403_v41 }
  0x58   : > { %553 = vmatmul.mubr.f32.gmra.mxu0 %v402_v42 }
  0x59   : > { %2420 = vmatprep.mubr.msk.bf16.mxu0 %vm2682_vm2, %v3544_v1 }
  0xfc   : > { %v519_v43 = vpop.f32.mrf.mxu0 }
  0xfd   : > { %2214 = vmatmul.mubr.msk.f32.vlgmr.msra.gmra.mxu1 %vm561_vm3, %v519_v43 }
  0xfe   : > { %v521_v44 = vpop.f32.mrf.mxu0  ;;  %661 = vmatprep.mubr.f32.mxu1 %v3544_v1 }
 0x100   : > { %v524_v45 = vpop.f32.mrf.mxu0 }
 0x101   : > { %2215 = vmatmul.mubr.msk.f32.gmra.mxu1 %vm561_vm3, %v524_v45  ;;  %v722_v62 = vpack.c.bf16 %v524_v45, %v519_v43 }
 0x102   : > { %v526_v46 = vpop.f32.mrf.mxu0  ;;  %667 = vmatprep.mubr.f32.mxu1 %v3544_v1 }
 0x104   : > { %v529_v47 = vpop.f32.mrf.mxu0 }
 0x105   : > { %2216 = vmatmul.mubr.msk.f32.gmra.mxu1 %vm561_vm3, %v529_v47 }
 0x106   : > { %v531_v48 = vpop.f32.mrf.mxu0  ;;  %673 = vmatprep.mubr.f32.mxu1 %v3544_v1 }
 0x108   : > { %v534_v49 = vpop.f32.mrf.mxu0 }
 0x109   : > { %2217 = vmatmul.mubr.msk.f32.gmra.mxu1 %vm561_vm3, %v534_v49  ;;  %v723_v61 = vpack.c.bf16 %v534_v49, %v529_v47 }
 0x10a   : > { %v536_v50 = vpop.f32.mrf.mxu0  ;;  %679 = vmatprep.mubr.f32.mxu1 %v3544_v1 }
 0x10c   : > { %v539_v51 = vpop.f32.mrf.mxu0 }
 0x10d   : > { %2218 = vmatmul.mubr.msk.f32.gmra.mxu1 %vm561_vm3, %v539_v51 }
 0x10e   : > { %v541_v52 = vpop.f32.mrf.mxu0  ;;  %685 = vmatprep.mubr.f32.mxu1 %v3544_v1 }
 0x110   : > { %v544_v53 = vpop.f32.mrf.mxu0 }
 0x111   : > { %2219 = vmatmul.mubr.msk.f32.gmra.mxu1 %vm561_vm3, %v544_v53  ;;  %v724_v60 = vpack.c.bf16 %v544_v53, %v539_v51 }
 0x112   : > { %v546_v54 = vpop.f32.mrf.mxu0  ;;  %691 = vmatprep.mubr.f32.mxu1 %v3544_v1 }
 0x114   : > { %v549_v55 = vpop.f32.mrf.mxu0 }
 0x115   : > { %2220 = vmatmul.mubr.msk.f32.gmra.mxu1 %vm561_vm3, %v549_v55 }
 0x116   : > { %v551_v56 = vpop.f32.mrf.mxu0  ;;  %697 = vmatprep.mubr.f32.mxu1 %v3544_v1 }
 0x118   : > { %v554_v57 = vpop.f32.mrf.mxu0 }
 0x119   : > { %v725_v58 = vpack.c.bf16 %v554_v57, %v549_v55  ;;  %2221 = vmatmul.mubr.msk.f32.gmra.mxu1 %vm561_vm3, %v554_v57 }
 0x11a   : > { %v556_v59 = vpop.f32.mrf.mxu0  ;;  %2382 = vmatprep.mubr.msk.bf16.mxu1 %vm2682_vm2, %v3544_v1 }
 0x11b   : > { %2375 = vmatpush3.bf16.msra.mxu1 %v725_v58 }
 0x11c   : > { %2376 = vmatprep.subr.bf16.mxu1 %v3544_v1 }
 0x11f   : > { %2377 = vmatpush3.bf16.msra.mxu1 %v724_v60 }
 0x120   : > { %2378 = vmatprep.subr.bf16.mxu1 %v3544_v1 }
 0x123   : > { %2379 = vmatpush3.bf16.msra.mxu1 %v723_v61 }
 0x124   : > { %2380 = vmatprep.subr.bf16.mxu1 %v3544_v1 }
 0x127   : > { %2381 = vmatpush3.bf16.msra.mxu1 %v722_v62 }
 0x128   : > { %2456 = vmatprep.subr.bf16.mxu1 %v3544_v1 }
 0x12a   : > { %2383 = vmatmul.mubr.msk.bf16.vlgmr.msra.gmra.mxu1 %vm428_vm0, %v2584_v63 }
 0x12b   : > { %2386 = vmatprep.mubr.msk.bf16.mxu1 %vm2682_vm2, %v3544_v1  ;;  %2457 = vmatpush3.bf16.msra.mxu1 %v2593_v11  ;;  %v1223_v11 = vld [vmem:[%s3534_s2] sm:$0xf] }
 0x12c   : > { %2458 = vmatprep.subr.bf16.mxu1 %v3544_v1 }
 0x12f   : > { %2459 = vmatpush3.bf16.msra.mxu1 %v2594_v10 }
 0x130   : > { %2534 = vmatprep.subr.bf16.mxu1 %v3544_v1 }
 0x132   : > { %2387 = vmatmul.mubr.msk.bf16.gmra.mxu1 %vm428_vm0, %v2585_v0 }
 0x133   : > { %2390 = vmatprep.mubr.msk.bf16.mxu1 %vm2682_vm2, %v3544_v1 }
 0x13a   : > { %2391 = vmatmul.mubr.msk.bf16.gmra.mxu1 %vm428_vm0, %v2586_v2 }
 0x13b   : > { %2394 = vmatprep.mubr.msk.bf16.mxu1 %vm2682_vm2, %v3544_v1 }
 0x142   : > { %2395 = vmatmul.mubr.msk.bf16.gmra.mxu1 %vm428_vm0, %v2587_v3 }
 0x143   : > { %2398 = vmatprep.mubr.msk.bf16.mxu1 %vm2682_vm2, %v3544_v1 }
 0x14a   : > { %2399 = vmatmul.mubr.msk.bf16.gmra.mxu1 %vm428_vm0, %v2588_v4 }
 0x14b   : > { %2402 = vmatprep.mubr.msk.bf16.mxu1 %vm2682_vm2, %v3544_v1 }
 0x152   : > { %2403 = vmatmul.mubr.msk.bf16.gmra.mxu1 %vm428_vm0, %v2589_v5 }
 0x153   : > { %2406 = vmatprep.mubr.msk.bf16.mxu1 %vm2682_vm2, %v3544_v1 }
 0x15a   : > { %2407 = vmatmul.mubr.msk.bf16.gmra.mxu1 %vm428_vm0, %v2590_v6 }
 0x15b   : > { %2410 = vmatprep.mubr.msk.bf16.mxu1 %vm2682_vm2, %v3544_v1 }
 0x162   : > { %2411 = vmatmul.mubr.msk.bf16.gmra.mxu1 %vm428_vm0, %v2591_v7 }
 0x163   : > { %2414 = vmatprep.mubr.msk.bf16.mxu1 %vm2682_vm2, %v3544_v1 }
 0x16a   : > { %2415 = vmatmul.mubr.msk.bf16.gmra.mxu1 %vm428_vm0, %v2592_v8 }
 0x16b   : > { %2460 = vmatprep.mubr.msk.bf16.mxu1 %vm2682_vm2, %v3544_v1 }
 0x1bd   : > { %v2975_v12 = vpop.f32.mrf.mxu1 }
 0x1bf   : > { %v2977_v13 = vpop.f32.mrf.mxu1 }
 0x1c1   : > { %v2979_v14 = vpop.f32.mrf.mxu1 }
 0x1c3   : > { %v2981_v15 = vpop.f32.mrf.mxu1 }
 0x1c5   : > { %v2983_v16 = vpop.f32.mrf.mxu1 }
 0x1c7   : > { %v2985_v17 = vpop.f32.mrf.mxu1 }
 0x1c9   : > { %v2987_v18 = vpop.f32.mrf.mxu1 }
 0x1cb   : > { %v2989_v19 = vpop.f32.mrf.mxu1 }
 0x1cd   : > { %v2991_v20 = vpop.f32.mrf.mxu1 }
 0x1cf   : > { %v2993_v21 = vpop.f32.mrf.mxu1 }
 0x1d1   : > { %v2995_v22 = vpop.f32.mrf.mxu1 }
 0x1d3   : > { %v2997_v23 = vpop.f32.mrf.mxu1 }
 0x1d5   : > { %v2999_v24 = vpop.f32.mrf.mxu1 }
 0x1d7   : > { %v3001_v25 = vpop.f32.mrf.mxu1 }
 0x1d9   : > { %v3003_v26 = vpop.f32.mrf.mxu1 }
 0x1db   : > { %v3005_v27 = vpop.f32.mrf.mxu1 }
 0x1dc   : > { %3546 = vst [vmem:[#allocation2_spill] sm:$0xff] %v3005_v27 }
 0x1ea   : > { %v832_v28 = vpop.f32.mrf.mxu1 }
 0x1ec   : > { %v2384_v29 = vpop.f32.mrf.mxu1 }
 0x1ee   : > { %v835_v30 = vpop.f32.mrf.mxu1 }
 0x1ef   : > { %v904_v31 = vpack.c.bf16 %v835_v30, %v832_v28  ;;  %v1252_v28 = vsel %vm1081_vm5, %v1223_v11, 0  ;;  %v3045_v30 = vld [vmem:[%s3533_s1] ss:$0 sm:$0xff] }
 0x1f0   : > { %v2385_v32 = vpop.f32.mrf.mxu1 }
 0x1f1   : > { %2421 = vmatmul.mubr.msk.bf16.vlgmr.msra.gmra.mxu0 %vm561_vm3, %v904_v31 }
 0x1f2   : > { %v840_v33 = vpop.f32.mrf.mxu1  ;;  %2424 = vmatprep.mubr.msk.bf16.mxu0 %vm2682_vm2, %v3544_v1  ;;  %2497 = vmatpush3.bf16.xpose.msra.mxu0 %v1252_v28 }
 0x1f4   : > { %v2388_v34 = vpop.f32.mrf.mxu1 }
 0x1f6   : > { %v843_v35 = vpop.f32.mrf.mxu1 }
 0x1f7   : > { %v905_v36 = vpack.c.bf16 %v843_v35, %v840_v33 }
 0x1f8   : > { %v2389_v37 = vpop.f32.mrf.mxu1 }
 0x1f9   : > { %2425 = vmatmul.mubr.msk.bf16.gmra.mxu0 %vm561_vm3, %v905_v36 }
 0x1fa   : > { %v848_v38 = vpop.f32.mrf.mxu1  ;;  %2428 = vmatprep.mubr.msk.bf16.mxu0 %vm2682_vm2, %v3544_v1 }
 0x1fc   : > { %v2392_v39 = vpop.f32.mrf.mxu1 }
 0x1fe   : > { %v851_v40 = vpop.f32.mrf.mxu1 }
 0x1ff   : > { %v906_v41 = vpack.c.bf16 %v851_v40, %v848_v38 }
 0x200   : > { %v2393_v42 = vpop.f32.mrf.mxu1 }
 0x201   : > { %2429 = vmatmul.mubr.msk.bf16.gmra.mxu0 %vm561_vm3, %v906_v41 }
 0x202   : > { %v856_v43 = vpop.f32.mrf.mxu1  ;;  %2432 = vmatprep.mubr.msk.bf16.mxu0 %vm2682_vm2, %v3544_v1 }
 0x204   : > { %v2396_v44 = vpop.f32.mrf.mxu1 }
 0x206   : > { %v859_v45 = vpop.f32.mrf.mxu1 }
 0x207   : > { %v907_v46 = vpack.c.bf16 %v859_v45, %v856_v43 }
 0x208   : > { %v2397_v47 = vpop.f32.mrf.mxu1 }
 0x209   : > { %2433 = vmatmul.mubr.msk.bf16.gmra.mxu0 %vm561_vm3, %v907_v46 }
 0x20a   : > { %v864_v48 = vpop.f32.mrf.mxu1  ;;  %2436 = vmatprep.mubr.msk.bf16.mxu0 %vm2682_vm2, %v3544_v1 }
 0x20c   : > { %v2400_v49 = vpop.f32.mrf.mxu1 }
 0x20e   : > { %v867_v50 = vpop.f32.mrf.mxu1 }
 0x20f   : > { %v908_v51 = vpack.c.bf16 %v867_v50, %v864_v48 }
 0x210   : > { %v2401_v52 = vpop.f32.mrf.mxu1 }
 0x211   : > { %2437 = vmatmul.mubr.msk.bf16.gmra.mxu0 %vm561_vm3, %v908_v51 }
 0x212   : > { %v872_v53 = vpop.f32.mrf.mxu1  ;;  %2440 = vmatprep.mubr.msk.bf16.mxu0 %vm2682_vm2, %v3544_v1 }
 0x214   : > { %v2404_v54 = vpop.f32.mrf.mxu1 }
 0x216   : > { %v875_v55 = vpop.f32.mrf.mxu1 }
 0x217   : > { %v909_v56 = vpack.c.bf16 %v875_v55, %v872_v53 }
 0x218   : > { %v2405_v57 = vpop.f32.mrf.mxu1 }
 0x219   : > { %2441 = vmatmul.mubr.msk.bf16.gmra.mxu0 %vm561_vm3, %v909_v56 }
 0x21a   : > { %v880_v58 = vpop.f32.mrf.mxu1  ;;  %2444 = vmatprep.mubr.msk.bf16.mxu0 %vm2682_vm2, %v3544_v1 }
 0x21c   : > { %v2408_v59 = vpop.f32.mrf.mxu1 }
 0x21e   : > { %v883_v60 = vpop.f32.mrf.mxu1 }
 0x21f   : > { %v910_v61 = vpack.c.bf16 %v883_v60, %v880_v58 }
 0x220   : > { %v2409_v62 = vpop.f32.mrf.mxu1 }
 0x221   : > { %2445 = vmatmul.mubr.msk.bf16.gmra.mxu0 %vm561_vm3, %v910_v61 }
 0x222   : > { %v888_v63 = vpop.f32.mrf.mxu1  ;;  %2448 = vmatprep.mubr.msk.bf16.mxu0 %vm2682_vm2, %v3544_v1 }
 0x224   : > { %v2412_v0 = vpop.f32.mrf.mxu1 }
 0x226   : > { %v891_v2 = vpop.f32.mrf.mxu1 }
 0x227   : > { %v911_v3 = vpack.c.bf16 %v891_v2, %v888_v63 }
 0x228   : > { %v2413_v4 = vpop.f32.mrf.mxu1 }
 0x229   : > { %2449 = vmatmul.mubr.msk.bf16.gmra.mxu0 %vm561_vm3, %v911_v3 }
 0x22a   : > { %v896_v5 = vpop.f32.mrf.mxu1  ;;  %2452 = vmatprep.mubr.msk.bf16.mxu0 %vm2682_vm2, %v3544_v1 }
 0x22c   : > { %v2416_v6 = vpop.f32.mrf.mxu1 }
 0x22e   : > { %v899_v7 = vpop.f32.mrf.mxu1 }
 0x22f   : > { %v912_v8 = vpack.c.bf16 %v899_v7, %v896_v5 }
 0x230   : > { %v2417_v9 = vpop.f32.mrf.mxu1 }
 0x231   : > { %2453 = vmatmul.mubr.msk.bf16.gmra.mxu0 %vm561_vm3, %v912_v8 }
 0x232   : > { %2498 = vmatprep.mubr.msk.bf16.mxu0 %vm2682_vm2, %v3544_v1 }
 0x2b1   : > { %v985_v29 = vpop.f32.mrf.mxu0 }
 0x2b2   : > { %v3048_v33 = vadd.f32 %v3045_v30, %v985_v29 }
 0x2b3   : > { %v2422_v31 = vpop.f32.mrf.mxu0 }
 0x2b5   : > { %v988_v32 = vpop.f32.mrf.mxu0 }
 0x2b6   : > { %v3051_v34 = vadd.f32 %v3045_v30, %v988_v32 }
 0x2b7   : > { %v2423_v35 = vpop.f32.mrf.mxu0 }
 0x2b8   : > { %v1060_v36 = vpack.c.bf16 %v3051_v34, %v3048_v33 }
 0x2b9   : > { %v993_v37 = vpop.f32.mrf.mxu0 }
 0x2ba   : > { %2461 = vmatmul.mubr.msk.bf16.vlgmr.msra.gmra.mxu1 %vm1081_vm5, %v1060_v36  ;;  %v3059_v40 = vadd.f32 %v3045_v30, %v993_v37 }
 0x2bb   : > { %v2426_v38 = vpop.f32.mrf.mxu0  ;;  %2464 = vmatprep.mubr.msk.bf16.mxu1 %vm2682_vm2, %v3544_v1 }
 0x2bd   : > { %v996_v39 = vpop.f32.mrf.mxu0 }
 0x2be   : > { %v3062_v41 = vadd.f32 %v3045_v30, %v996_v39 }
 0x2bf   : > { %v2427_v42 = vpop.f32.mrf.mxu0 }
 0x2c0   : > { %v1061_v43 = vpack.c.bf16 %v3062_v41, %v3059_v40 }
 0x2c1   : > { %v1001_v44 = vpop.f32.mrf.mxu0 }
 0x2c2   : > { %2465 = vmatmul.mubr.msk.bf16.gmra.mxu1 %vm1081_vm5, %v1061_v43  ;;  %v3070_v47 = vadd.f32 %v3045_v30, %v1001_v44 }
 0x2c3   : > { %v2430_v45 = vpop.f32.mrf.mxu0  ;;  %2468 = vmatprep.mubr.msk.bf16.mxu1 %vm2682_vm2, %v3544_v1 }
 0x2c5   : > { %v1004_v46 = vpop.f32.mrf.mxu0 }
 0x2c6   : > { %v3073_v48 = vadd.f32 %v3045_v30, %v1004_v46 }
 0x2c7   : > { %v2431_v49 = vpop.f32.mrf.mxu0 }
 0x2c8   : > { %v1062_v50 = vpack.c.bf16 %v3073_v48, %v3070_v47 }
 0x2c9   : > { %v1009_v51 = vpop.f32.mrf.mxu0 }
 0x2ca   : > { %2469 = vmatmul.mubr.msk.bf16.gmra.mxu1 %vm1081_vm5, %v1062_v50  ;;  %v3081_v54 = vadd.f32 %v3045_v30, %v1009_v51 }
 0x2cb   : > { %v2434_v52 = vpop.f32.mrf.mxu0  ;;  %2472 = vmatprep.mubr.msk.bf16.mxu1 %vm2682_vm2, %v3544_v1 }
 0x2cd   : > { %v1012_v53 = vpop.f32.mrf.mxu0 }
 0x2ce   : > { %v3084_v55 = vadd.f32 %v3045_v30, %v1012_v53 }
 0x2cf   : > { %v2435_v56 = vpop.f32.mrf.mxu0 }
 0x2d0   : > { %v1063_v57 = vpack.c.bf16 %v3084_v55, %v3081_v54 }
 0x2d1   : > { %v1017_v58 = vpop.f32.mrf.mxu0 }
 0x2d2   : > { %2473 = vmatmul.mubr.msk.bf16.gmra.mxu1 %vm1081_vm5, %v1063_v57  ;;  %v3092_v61 = vadd.f32 %v3045_v30, %v1017_v58 }
 0x2d3   : > { %v2438_v59 = vpop.f32.mrf.mxu0  ;;  %2476 = vmatprep.mubr.msk.bf16.mxu1 %vm2682_vm2, %v3544_v1 }
 0x2d5   : > { %v1020_v60 = vpop.f32.mrf.mxu0 }
 0x2d6   : > { %v3095_v62 = vadd.f32 %v3045_v30, %v1020_v60 }
 0x2d7   : > { %v2439_v63 = vpop.f32.mrf.mxu0 }
 0x2d8   : > { %v1064_v0 = vpack.c.bf16 %v3095_v62, %v3092_v61 }
 0x2d9   : > { %v1025_v2 = vpop.f32.mrf.mxu0 }
 0x2da   : > { %2477 = vmatmul.mubr.msk.bf16.gmra.mxu1 %vm1081_vm5, %v1064_v0  ;;  %v3103_v5 = vadd.f32 %v3045_v30, %v1025_v2 }
 0x2db   : > { %v2442_v3 = vpop.f32.mrf.mxu0  ;;  %2480 = vmatprep.mubr.msk.bf16.mxu1 %vm2682_vm2, %v3544_v1 }
 0x2dd   : > { %v1028_v4 = vpop.f32.mrf.mxu0 }
 0x2de   : > { %v3106_v6 = vadd.f32 %v3045_v30, %v1028_v4 }
 0x2df   : > { %v2443_v7 = vpop.f32.mrf.mxu0 }
 0x2e0   : > { %v1065_v8 = vpack.c.bf16 %v3106_v6, %v3103_v5 }
 0x2e1   : > { %v1033_v9 = vpop.f32.mrf.mxu0 }
 0x2e2   : > { %2481 = vmatmul.mubr.msk.bf16.gmra.mxu1 %vm1081_vm5, %v1065_v8  ;;  %v3114_v28 = vadd.f32 %v3045_v30, %v1033_v9 }
 0x2e3   : > { %v2446_v10 = vpop.f32.mrf.mxu0  ;;  %2484 = vmatprep.mubr.msk.bf16.mxu1 %vm2682_vm2, %v3544_v1 }
 0x2e5   : > { %v1036_v11 = vpop.f32.mrf.mxu0 }
 0x2e6   : > { %v3117_v29 = vadd.f32 %v3045_v30, %v1036_v11 }
 0x2e7   : > { %v2447_v31 = vpop.f32.mrf.mxu0 }
 0x2e8   : > { %v1066_v32 = vpack.c.bf16 %v3117_v29, %v3114_v28 }
 0x2e9   : > { %v1041_v35 = vpop.f32.mrf.mxu0 }
 0x2ea   : > { %2485 = vmatmul.mubr.msk.bf16.gmra.mxu1 %vm1081_vm5, %v1066_v32  ;;  %v3125_v38 = vadd.f32 %v3045_v30, %v1041_v35 }
 0x2eb   : > { %v2450_v36 = vpop.f32.mrf.mxu0  ;;  %2488 = vmatprep.mubr.msk.bf16.mxu1 %vm2682_vm2, %v3544_v1 }
 0x2ed   : > { %v1044_v37 = vpop.f32.mrf.mxu0 }
 0x2ee   : > { %v3128_v39 = vadd.f32 %v3045_v30, %v1044_v37 }
 0x2ef   : > { %v2451_v42 = vpop.f32.mrf.mxu0 }
 0x2f0   : > { %v1067_v43 = vpack.c.bf16 %v3128_v39, %v3125_v38 }
 0x2f1   : > { %v1049_v44 = vpop.f32.mrf.mxu0 }
 0x2f2   : > { %2489 = vmatmul.mubr.msk.bf16.gmra.mxu1 %vm1081_vm5, %v1067_v43  ;;  %v3136_v46 = vadd.f32 %v3045_v30, %v1049_v44 }
 0x2f3   : > { %v2454_v45 = vpop.f32.mrf.mxu0  ;;  %2492 = vmatprep.mubr.msk.bf16.mxu1 %vm2682_vm2, %v3544_v1 }
 0x2f5   : > { %v1052_v49 = vpop.f32.mrf.mxu0 }
 0x2f6   : > { %v3139_v50 = vadd.f32 %v3045_v30, %v1052_v49 }
 0x2f7   : > { %v2455_v51 = vpop.f32.mrf.mxu0 }
 0x2f8   : > { %v1068_v52 = vpack.c.bf16 %v3139_v50, %v3136_v46 }
 0x2fa   : > { %2493 = vmatmul.mubr.msk.bf16.gmra.mxu1 %vm1081_vm5, %v1068_v52 }
 0x2fb   : > { %2536 = vmatprep.mubr.msk.bf16.mxu1 %vm2682_vm2, %v3544_v1 }
 0x37a   : > { %v1143_v53 = vpop.f32.mrf.mxu1 }
 0x37c   : > { %v2462_v56 = vpop.f32.mrf.mxu1 }
 0x37e   : > { %v1146_v57 = vpop.f32.mrf.mxu1 }
 0x37f   : > { %v1214_v58 = vpack.c.bf16 %v1146_v57, %v1143_v53 }
 0x380   : > { %v2463_v59 = vpop.f32.mrf.mxu1 }
 0x381   : > { %2499 = vmatmul.mubr.msk.bf16.vlgmr.msra.gmra.mxu0 %vm1081_vm5, %v1214_v58 }
 0x382   : > { %v1151_v60 = vpop.f32.mrf.mxu1  ;;  %2502 = vmatprep.mubr.msk.bf16.mxu0 %vm2682_vm2, %v3544_v1 }
 0x384   : > { %v2466_v30 = vpop.f32.mrf.mxu1 }
 0x386   : > { %v1154_v63 = vpop.f32.mrf.mxu1 }
 0x387   : > { %v1215_v0 = vpack.c.bf16 %v1154_v63, %v1151_v60 }
 0x388   : > { %v2467_v2 = vpop.f32.mrf.mxu1 }
 0x389   : > { %2503 = vmatmul.mubr.msk.bf16.gmra.mxu0 %vm1081_vm5, %v1215_v0 }
 0x38a   : > { %v1159_v3 = vpop.f32.mrf.mxu1  ;;  %2506 = vmatprep.mubr.msk.bf16.mxu0 %vm2682_vm2, %v3544_v1 }
 0x38c   : > { %v2470_v4 = vpop.f32.mrf.mxu1 }
 0x38e   : > { %v1162_v7 = vpop.f32.mrf.mxu1 }
 0x38f   : > { %v1216_v8 = vpack.c.bf16 %v1162_v7, %v1159_v3 }
 0x390   : > { %v2471_v9 = vpop.f32.mrf.mxu1 }
 0x391   : > { %2507 = vmatmul.mubr.msk.bf16.gmra.mxu0 %vm1081_vm5, %v1216_v8 }
 0x392   : > { %v1167_v10 = vpop.f32.mrf.mxu1  ;;  %2510 = vmatprep.mubr.msk.bf16.mxu0 %vm2682_vm2, %v3544_v1 }
 0x394   : > { %v2474_v11 = vpop.f32.mrf.mxu1 }
 0x396   : > { %v1170_v31 = vpop.f32.mrf.mxu1 }
 0x397   : > { %v1217_v32 = vpack.c.bf16 %v1170_v31, %v1167_v10 }
 0x398   : > { %v2475_v35 = vpop.f32.mrf.mxu1 }
 0x399   : > { %2511 = vmatmul.mubr.msk.bf16.gmra.mxu0 %vm1081_vm5, %v1217_v32 }
 0x39a   : > { %v1175_v36 = vpop.f32.mrf.mxu1  ;;  %2514 = vmatprep.mubr.msk.bf16.mxu0 %vm2682_vm2, %v3544_v1 }
 0x39c   : > { %v2478_v37 = vpop.f32.mrf.mxu1 }
 0x39e   : > { %v1178_v42 = vpop.f32.mrf.mxu1 }
 0x39f   : > { %v1218_v43 = vpack.c.bf16 %v1178_v42, %v1175_v36 }
 0x3a0   : > { %v2479_v44 = vpop.f32.mrf.mxu1 }
 0x3a1   : > { %2515 = vmatmul.mubr.msk.bf16.gmra.mxu0 %vm1081_vm5, %v1218_v43 }
 0x3a2   : > { %v1183_v45 = vpop.f32.mrf.mxu1  ;;  %2518 = vmatprep.mubr.msk.bf16.mxu0 %vm2682_vm2, %v3544_v1 }
 0x3a4   : > { %v2482_v49 = vpop.f32.mrf.mxu1 }
 0x3a6   : > { %v1186_v51 = vpop.f32.mrf.mxu1 }
 0x3a7   : > { %v1219_v52 = vpack.c.bf16 %v1186_v51, %v1183_v45 }
 0x3a8   : > { %v2483_v53 = vpop.f32.mrf.mxu1 }
 0x3a9   : > { %2519 = vmatmul.mubr.msk.bf16.gmra.mxu0 %vm1081_vm5, %v1219_v52 }
 0x3aa   : > { %v1191_v56 = vpop.f32.mrf.mxu1  ;;  %2522 = vmatprep.mubr.msk.bf16.mxu0 %vm2682_vm2, %v3544_v1 }
 0x3ac   : > { %v2486_v57 = vpop.f32.mrf.mxu1 }
 0x3ae   : > { %v1194_v58 = vpop.f32.mrf.mxu1 }
 0x3af   : > { %v1220_v59 = vpack.c.bf16 %v1194_v58, %v1191_v56 }
 0x3b0   : > { %v2487_v60 = vpop.f32.mrf.mxu1 }
 0x3b1   : > { %2523 = vmatmul.mubr.msk.bf16.gmra.mxu0 %vm1081_vm5, %v1220_v59 }
 0x3b2   : > { %v1199_v30 = vpop.f32.mrf.mxu1  ;;  %2526 = vmatprep.mubr.msk.bf16.mxu0 %vm2682_vm2, %v3544_v1 }
 0x3b4   : > { %v2490_v63 = vpop.f32.mrf.mxu1 }
 0x3b6   : > { %v1202_v0 = vpop.f32.mrf.mxu1 }
 0x3b7   : > { %v1221_v2 = vpack.c.bf16 %v1202_v0, %v1199_v30 }
 0x3b8   : > { %v2491_v3 = vpop.f32.mrf.mxu1 }
 0x3b9   : > { %2527 = vmatmul.mubr.msk.bf16.gmra.mxu0 %vm1081_vm5, %v1221_v2 }
 0x3ba   : > { %v1207_v4 = vpop.f32.mrf.mxu1  ;;  %2530 = vmatprep.mubr.msk.bf16.mxu0 %vm2682_vm2, %v3544_v1 }
 0x3bc   : > { %v2494_v7 = vpop.f32.mrf.mxu1 }
 0x3be   : > { %v1210_v8 = vpop.f32.mrf.mxu1 }
 0x3bf   : > { %v1222_v9 = vpack.c.bf16 %v1210_v8, %v1207_v4 }
 0x3c0   : > { %v2495_v10 = vpop.f32.mrf.mxu1 }
 0x3c1   : > { %2531 = vmatmul.mubr.msk.bf16.gmra.mxu0 %vm1081_vm5, %v1222_v9 }
 0x441   : > { %v1288_v11 = vpop.f32.mrf.mxu0 }
 0x442   : > { %v3171_v31 = vmul.f32 0.17677669, %v1288_v11 }
 0x443   : > { %v2500_v32 = vpop.f32.mrf.mxu0 }
 0x444   : > { %v1378_v35 = vsel %vm1377_vm6, %v3171_v31, -inf }
 0x445   : > { %1379 = vmax.xlane.f32.xlu0 %v1378_v35  ;;  %v1291_v36 = vpop.f32.mrf.mxu0 }
 0x446   : > { %v3175_v37 = vmul.f32 0.17677669, %v1291_v36 }
 0x447   : > { %v2501_v42 = vpop.f32.mrf.mxu0 }
 0x448   : > { %v1381_v43 = vsel %vm1377_vm6, %v3175_v37, -inf }
 0x449   : > { %1382 = vmax.xlane.f32.xlu0 %v1381_v43  ;;  %v1296_v44 = vpop.f32.mrf.mxu0 }
 0x44a   : > { %v3179_v45 = vmul.f32 0.17677669, %v1296_v44 }
 0x44b   : > { %v2504_v49 = vpop.f32.mrf.mxu0 }
 0x44c   : > { %v1384_v51 = vsel %vm1377_vm6, %v3179_v45, -inf }
 0x44d   : > { %1385 = vmax.xlane.f32.xlu1 %v1384_v51  ;;  %v1299_v52 = vpop.f32.mrf.mxu0 }
 0x44e   : > { %v3183_v53 = vmul.f32 0.17677669, %v1299_v52 }
 0x44f   : > { %v2505_v56 = vpop.f32.mrf.mxu0 }
 0x450   : > { %v1387_v57 = vsel %vm1377_vm6, %v3183_v53, -inf }
 0x451   : > { %1388 = vmax.xlane.f32.xlu1 %v1387_v57  ;;  %v1304_v58 = vpop.f32.mrf.mxu0 }
 0x452   : > { %v3187_v59 = vmul.f32 0.17677669, %v1304_v58 }
 0x453   : > { %v2508_v60 = vpop.f32.mrf.mxu0 }
 0x454   : > { %v1390_v30 = vsel %vm1377_vm6, %v3187_v59, -inf }
 0x455   : > { %1391 = vmax.xlane.f32.xlu0 %v1390_v30  ;;  %v1307_v63 = vpop.f32.mrf.mxu0 }
 0x456   : > { %v3191_v0 = vmul.f32 0.17677669, %v1307_v63 }
 0x457   : > { %v2509_v2 = vpop.f32.mrf.mxu0 }
 0x458   : > { %v1393_v3 = vsel %vm1377_vm6, %v3191_v0, -inf }
 0x459   : > { %1394 = vmax.xlane.f32.xlu1 %v1393_v3  ;;  %v1312_v4 = vpop.f32.mrf.mxu0 }
 0x45a   : > { %v3195_v7 = vmul.f32 0.17677669, %v1312_v4 }
 0x45b   : > { %v2512_v8 = vpop.f32.mrf.mxu0 }
 0x45c   : > { %v1396_v9 = vsel %vm1377_vm6, %v3195_v7, -inf }
 0x45d   : > { %1397 = vmax.xlane.f32.xlu0 %v1396_v9  ;;  %v1315_v10 = vpop.f32.mrf.mxu0 }
 0x45e   : > { %v3199_v11 = vmul.f32 0.17677669, %v1315_v10 }
 0x45f   : > { %v2513_v32 = vpop.f32.mrf.mxu0 }
 0x460   : > { %v1399_v35 = vsel %vm1377_vm6, %v3199_v11, -inf }
 0x461   : > { %1400 = vmax.xlane.f32.xlu1 %v1399_v35  ;;  %v1320_v36 = vpop.f32.mrf.mxu0 }
 0x462   : > { %v3203_v42 = vmul.f32 0.17677669, %v1320_v36 }
 0x463   : > { %v2516_v43 = vpop.f32.mrf.mxu0 }
 0x464   : > { %v1402_v44 = vsel %vm1377_vm6, %v3203_v42, -inf }
 0x465   : > { %1403 = vmax.xlane.f32.xlu0 %v1402_v44  ;;  %v1323_v49 = vpop.f32.mrf.mxu0 }
 0x466   : > { %v3207_v51 = vmul.f32 0.17677669, %v1323_v49 }
 0x467   : > { %v2517_v52 = vpop.f32.mrf.mxu0 }
 0x468   : > { %v1405_v56 = vsel %vm1377_vm6, %v3207_v51, -inf }
 0x469   : > { %1406 = vmax.xlane.f32.xlu1 %v1405_v56  ;;  %v1328_v57 = vpop.f32.mrf.mxu0 }
 0x46a   : > { %v3211_v58 = vmul.f32 0.17677669, %v1328_v57 }
 0x46b   : > { %v2520_v60 = vpop.f32.mrf.mxu0 }
 0x46c   : > { %v1408_v30 = vsel %vm1377_vm6, %v3211_v58, -inf }
 0x46d   : > { %1409 = vmax.xlane.f32.xlu0 %v1408_v30  ;;  %v1331_v63 = vpop.f32.mrf.mxu0 }
 0x46e   : > { %v3215_v2 = vmul.f32 0.17677669, %v1331_v63 }
 0x46f   : > { %v2521_v3 = vpop.f32.mrf.mxu0 }
 0x470   : > { %v1411_v4 = vsel %vm1377_vm6, %v3215_v2, -inf }
 0x471   : > { %1412 = vmax.xlane.f32.xlu1 %v1411_v4  ;;  %v1336_v8 = vpop.f32.mrf.mxu0 }
 0x472   : > { %v3219_v9 = vmul.f32 0.17677669, %v1336_v8 }
 0x473   : > { %v2524_v10 = vpop.f32.mrf.mxu0 }
 0x474   : > { %v1414_v32 = vsel %vm1377_vm6, %v3219_v9, -inf }
 0x475   : > { %1415 = vmax.xlane.f32.xlu0 %v1414_v32  ;;  %v1339_v35 = vpop.f32.mrf.mxu0 }
 0x476   : > { %v3223_v36 = vmul.f32 0.17677669, %v1339_v35 }
 0x477   : > { %v2525_v43 = vpop.f32.mrf.mxu0 }
 0x478   : > { %v1417_v44 = vsel %vm1377_vm6, %v3223_v36, -inf }
 0x479   : > { %1418 = vmax.xlane.f32.xlu1 %v1417_v44  ;;  %v1344_v49 = vpop.f32.mrf.mxu0 }
 0x47a   : > { %v3227_v52 = vmul.f32 0.17677669, %v1344_v49 }
 0x47b   : > { %v2528_v56 = vpop.f32.mrf.mxu0 }
 0x47c   : > { %v1420_v57 = vsel %vm1377_vm6, %v3227_v52, -inf  ;;  %v1576_v56 = vld [vmem:[%s3535_s3] sm:$0xf] }
 0x47d   : > { %1421 = vmax.xlane.f32.xlu0 %v1420_v57  ;;  %v1347_v60 = vpop.f32.mrf.mxu0  ;;  %v1614_v57 = vsel %vm586_vm1, %v1576_v56, 0 }
 0x47e   : > { %v3231_v30 = vmul.f32 0.17677669, %v1347_v60  ;;  %2535 = vmatpush3.bf16.msra.mxu1 %v1614_v57 }
 0x47f   : > { %v2529_v63 = vpop.f32.mrf.mxu0 }
 0x480   : > { %v1423_v3 = vsel %vm1377_vm6, %v3231_v30, -inf }
 0x481   : > { %1424 = vmax.xlane.f32.xlu1 %v1423_v3  ;;  %v1352_v4 = vpop.f32.mrf.mxu0 }
 0x482   : > { %v3235_v8 = vmul.f32 0.17677669, %v1352_v4 }
 0x483   : > { %v2532_v10 = vpop.f32.mrf.mxu0 }
 0x484   : > { %v1426_v32 = vsel %vm1377_vm6, %v3235_v8, -inf }
 0x485   : > { %1427 = vmax.xlane.f32.xlu0 %v1426_v32  ;;  %v1355_v35 = vpop.f32.mrf.mxu0 }
 0x486   : > { %v3239_v43 = vmul.f32 0.17677669, %v1355_v35 }
 0x487   : > { %v2533_v44 = vpop.f32.mrf.mxu0 }
 0x488   : > { %v1429_v49 = vsel %vm1377_vm6, %v3239_v43, -inf }
 0x489   : > { %1430 = vmax.xlane.f32.xlu1 %v1429_v49 }
 0x4ce   : > { %v1380_v60 = vpop.xlane.xlu0 %1379 }
 0x4cf   : > { %v1432_v63 = vsub.f32 %v3171_v31, %v1380_v60 }
 0x4d1   : > { %v1450_v3 = vmul.f32 1.442695, %v1432_v63 }
 0x4d2   : > { %v1383_v4 = vpop.xlane.xlu0 %1382 }
 0x4d3   : > { %2601 = vpow2.f32 %v1450_v3  ;;  %v1433_v10 = vsub.f32 %v3175_v37, %v1383_v4 }
 0x4d5   : > { %v1452_v32 = vmul.f32 1.442695, %v1433_v10 }
 0x4d6   : > { %v1386_v35 = vpop.xlane.xlu1 %1385 }
 0x4d7   : > { %2603 = vpow2.f32 %v1452_v32  ;;  %v1434_v44 = vsub.f32 %v3179_v45, %v1386_v35 }
 0x4d9   : > { %v1454_v49 = vmul.f32 1.442695, %v1434_v44 }
 0x4da   : > { %v1389_v1 = vpop.xlane.xlu1 %1388 }
 0x4db   : > { %2605 = vpow2.f32 %v1454_v49  ;;  %v1435_v27 = vsub.f32 %v3183_v53, %v1389_v1 }
 0x4dd   : > { %v1456_v56 = vmul.f32 1.442695, %v1435_v27 }
 0x4de   : > { %v1392_v57 = vpop.xlane.xlu0 %1391 }
 0x4df   : > { %2607 = vpow2.f32 %v1456_v56  ;;  %v1436_v31 = vsub.f32 %v3187_v59, %v1392_v57 }
 0x4e0   : > { %v3252_v60 = vpop.eup %2601 }
 0x4e1   : > { %v1458_v63 = vmul.f32 1.442695, %v1436_v31  ;;  %v1486_v37 = vsel %vm1377_vm6, %v3252_v60, 0.0 }
 0x4e2   : > { %v1395_v3 = vpop.xlane.xlu1 %1394  ;;  %1487 = vadd.xlane.f32.xlu0 %v1486_v37 }
 0x4e3   : > { %2609 = vpow2.f32 %v1458_v63  ;;  %v1437_v45 = vsub.f32 %v3191_v0, %v1395_v3 }
 0x4e4   : > { %v3257_v4 = vpop.eup %2603 }
 0x4e5   : > { %v1460_v10 = vmul.f32 1.442695, %v1437_v45  ;;  %v1489_v1 = vsel %vm1377_vm6, %v3257_v4, 0.0 }
 0x4e6   : > { %v1398_v27 = vpop.xlane.xlu0 %1397  ;;  %1490 = vadd.xlane.f32.xlu1 %v1489_v1 }
 0x4e7   : > { %2611 = vpow2.f32 %v1460_v10  ;;  %v1438_v53 = vsub.f32 %v3195_v7, %v1398_v27 }
 0x4e8   : > { %v3262_v59 = vpop.eup %2605 }
 0x4e9   : > { %v1462_v32 = vmul.f32 1.442695, %v1438_v53  ;;  %v1492_v35 = vsel %vm1377_vm6, %v3262_v59, 0.0 }
 0x4ea   : > { %v1401_v44 = vpop.xlane.xlu1 %1400  ;;  %1493 = vadd.xlane.f32.xlu0 %v1492_v35 }
 0x4eb   : > { %2613 = vpow2.f32 %v1462_v32  ;;  %v1439_v0 = vsub.f32 %v3199_v11, %v1401_v44 }
 0x4ec   : > { %v3267_v49 = vpop.eup %2607 }
 0x4ed   : > { %v1464_v56 = vmul.f32 1.442695, %v1439_v0  ;;  %v1495_v57 = vsel %vm1377_vm6, %v3267_v49, 0.0 }
 0x4ee   : > { %v1404_v31 = vpop.xlane.xlu0 %1403  ;;  %1496 = vadd.xlane.f32.xlu1 %v1495_v57 }
 0x4ef   : > { %2615 = vpow2.f32 %v1464_v56  ;;  %v1440_v7 = vsub.f32 %v3203_v42, %v1404_v31 }
 0x4f0   : > { %v3272_v63 = vpop.eup %2609 }
 0x4f1   : > { %v1466_v37 = vmul.f32 1.442695, %v1440_v7  ;;  %v1498_v3 = vsel %vm1377_vm6, %v3272_v63, 0.0 }
 0x4f2   : > { %v1407_v45 = vpop.xlane.xlu1 %1406  ;;  %1499 = vadd.xlane.f32.xlu0 %v1498_v3 }
 0x4f3   : > { %2617 = vpow2.f32 %v1466_v37  ;;  %v1441_v11 = vsub.f32 %v3207_v51, %v1407_v45 }
 0x4f4   : > { %v3277_v10 = vpop.eup %2611 }
 0x4f5   : > { %v1468_v1 = vmul.f32 1.442695, %v1441_v11  ;;  %v1501_v27 = vsel %vm1377_vm6, %v3277_v10, 0.0 }
 0x4f6   : > { %v1410_v53 = vpop.xlane.xlu0 %1409  ;;  %1502 = vadd.xlane.f32.xlu1 %v1501_v27 }
 0x4f7   : > { %2619 = vpow2.f32 %v1468_v1  ;;  %v1442_v42 = vsub.f32 %v3211_v58, %v1410_v53 }
 0x4f8   : > { %v3282_v32 = vpop.eup %2613 }
 0x4f9   : > { %v1470_v35 = vmul.f32 1.442695, %v1442_v42  ;;  %v1504_v44 = vsel %vm1377_vm6, %v3282_v32, 0.0 }
 0x4fa   : > { %v1413_v0 = vpop.xlane.xlu1 %1412  ;;  %1505 = vadd.xlane.f32.xlu0 %v1504_v44 }
 0x4fb   : > { %2621 = vpow2.f32 %v1470_v35  ;;  %v1443_v51 = vsub.f32 %v3215_v2, %v1413_v0 }
 0x4fc   : > { %v3287_v56 = vpop.eup %2615 }
 0x4fd   : > { %v1472_v57 = vmul.f32 1.442695, %v1443_v51  ;;  %v1507_v31 = vsel %vm1377_vm6, %v3287_v56, 0.0 }
 0x4fe   : > { %v1416_v7 = vpop.xlane.xlu0 %1415  ;;  %1508 = vadd.xlane.f32.xlu1 %v1507_v31 }
 0x4ff   : > { %2623 = vpow2.f32 %v1472_v57  ;;  %v1444_v58 = vsub.f32 %v3219_v9, %v1416_v7 }
 0x500   : > { %v3292_v37 = vpop.eup %2617 }
 0x501   : > { %v1474_v3 = vmul.f32 1.442695, %v1444_v58  ;;  %v1510_v45 = vsel %vm1377_vm6, %v3292_v37, 0.0 }
 0x502   : > { %v1419_v11 = vpop.xlane.xlu1 %1418  ;;  %1511 = vadd.xlane.f32.xlu0 %v1510_v45 }
 0x503   : > { %2625 = vpow2.f32 %v1474_v3  ;;  %v1445_v2 = vsub.f32 %v3223_v36, %v1419_v11 }
 0x504   : > { %v3297_v1 = vpop.eup %2619 }
 0x505   : > { %v1476_v27 = vmul.f32 1.442695, %v1445_v2  ;;  %v1513_v53 = vsel %vm1377_vm6, %v3297_v1, 0.0 }
 0x506   : > { %v1422_v42 = vpop.xlane.xlu0 %1421  ;;  %1514 = vadd.xlane.f32.xlu1 %v1513_v53 }
 0x507   : > { %2627 = vpow2.f32 %v1476_v27  ;;  %v1446_v9 = vsub.f32 %v3227_v52, %v1422_v42 }
 0x508   : > { %v3302_v35 = vpop.eup %2621 }
 0x509   : > { %v1478_v44 = vmul.f32 1.442695, %v1446_v9  ;;  %v1516_v0 = vsel %vm1377_vm6, %v3302_v35, 0.0 }
 0x50a   : > { %v1425_v51 = vpop.xlane.xlu1 %1424  ;;  %1517 = vadd.xlane.f32.xlu0 %v1516_v0 }
 0x50b   : > { %2629 = vpow2.f32 %v1478_v44  ;;  %v1447_v36 = vsub.f32 %v3231_v30, %v1425_v51 }
 0x50c   : > { %v3307_v57 = vpop.eup %2623 }
 0x50d   : > { %v1480_v31 = vmul.f32 1.442695, %v1447_v36  ;;  %v1519_v7 = vsel %vm1377_vm6, %v3307_v57, 0.0 }
 0x50e   : > { %v1428_v58 = vpop.xlane.xlu0 %1427  ;;  %1520 = vadd.xlane.f32.xlu1 %v1519_v7  ;;  %v2595_v7 = vld [vmem:[%s3541_s9 + $0x10] ss:$8 sps:$4 sm:$0xff]  }
 0x50f   : > { %2631 = vpow2.f32 %v1480_v31  ;;  %v1448_v52 = vsub.f32 %v3235_v8, %v1428_v58  ;;  %v2597_v58 = vld [vmem:[%s3541_s9 + $0x14] ss:$8 sps:$4 sm:$0xff]  }
 0x510   : > { %v3312_v3 = vpop.eup %2625  ;;  %1811 = vmatprep.subr.bf16.mxu0 %v2597_v58 }
 0x511   : > { %v1482_v45 = vmul.f32 1.442695, %v1448_v52  ;;  %v1522_v11 = vsel %vm1377_vm6, %v3312_v3, 0.0  ;;  %1812 = vmatpush1.bf16.msra.mxu0 %v2595_v7 }
 0x512   : > { %1523 = vadd.xlane.f32.xlu0 %v1522_v11  ;;  %v1431_v2 = vpop.xlane.xlu1 %1430 }
 0x513   : > { %2633 = vpow2.f32 %v1482_v45  ;;  %v1449_v30 = vsub.f32 %v3239_v43, %v1431_v2 }
 0x514   : > { %v3317_v27 = vpop.eup %2627 }
 0x515   : > { %v1484_v53 = vmul.f32 1.442695, %v1449_v30  ;;  %v1525_v42 = vsel %vm1377_vm6, %v3317_v27, 0.0 }
 0x516   : > { %1526 = vadd.xlane.f32.xlu1 %v1525_v42 }
 0x517   : > { %2635 = vpow2.f32 %v1484_v53 }
 0x518   : > { %v3321_v8 = vpop.eup %2629 }
 0x519   : > { %v1528_v9 = vsel %vm1377_vm6, %v3321_v8, 0.0 }
 0x51a   : > { %1529 = vadd.xlane.f32.xlu0 %v1528_v9 }
 0x51c   : > { %v3325_v44 = vpop.eup %2631 }
 0x51d   : > { %v1531_v0 = vsel %vm1377_vm6, %v3325_v44, 0.0 }
 0x51e   : > { %1532 = vadd.xlane.f32.xlu1 %v1531_v0 }
 0x520   : > { %v3329_v43 = vpop.eup %2633 }
 0x521   : > { %v1534_v51 = vsel %vm1377_vm6, %v3329_v43, 0.0 }
 0x522   : > { %1535 = vadd.xlane.f32.xlu0 %v1534_v51 }
 0x524   : > { %v3333_v36 = vpop.eup %2635 }
 0x525   : > { %v1537_v31 = vsel %vm1377_vm6, %v3333_v36, 0.0 }
 0x526   : > { %1538 = vadd.xlane.f32.xlu1 %v1537_v31 }
 0x56b   : > { %v1488_v52 = vpop.xlane.xlu0 %1487 }
 0x56c   : > { %2637 = vrcp.f32 %v1488_v52  ;;  %v3547_v52 = vmov 0.0  }
 0x56f   : > { %v1491_v45 = vpop.xlane.xlu1 %1490 }
 0x570   : > { %2639 = vrcp.f32 %v1491_v45 }
 0x573   : > { %v1494_v11 = vpop.xlane.xlu0 %1493 }
 0x574   : > { %2641 = vrcp.f32 %v1494_v11 }
 0x577   : > { %v1497_v2 = vpop.xlane.xlu1 %1496 }
 0x578   : > { %2643 = vrcp.f32 %v1497_v2 }
 0x579   : > { %v2638_v30 = vpop.eup %2637 }
 0x57a   : > { %v1558_v9 = vmul.f32 %v2638_v30, %v3252_v60 }
 0x57b   : > { %v1500_v53 = vpop.xlane.xlu0 %1499 }
 0x57c   : > { %2645 = vrcp.f32 %v1500_v53 }
 0x57d   : > { %v2640_v42 = vpop.eup %2639 }
 0x57e   : > { %v1559_v0 = vmul.f32 %v2640_v42, %v3257_v4 }
 0x57f   : > { %v1503_v51 = vpop.xlane.xlu1 %1502 }
 0x580   : > { %v1577_v31 = vpack.c.bf16 %v1559_v0, %v1558_v9  ;;  %2647 = vrcp.f32 %v1503_v51 }
 0x581   : > { %v2642_v7 = vpop.eup %2641 }
 0x582   : > { %2537 = vmatmul.mubr.msk.bf16.vlgmr.msra.gmra.mxu1 %vm1377_vm6, %v1577_v31  ;;  %v1560_v11 = vmul.f32 %v2642_v7, %v3262_v59 }
 0x583   : > { %v1506_v58 = vpop.xlane.xlu0 %1505  ;;  %2540 = vmatprep.mubr.msk.bf16.mxu1 %vm2682_vm2, %v3547_v52 }
 0x584   : > { %2649 = vrcp.f32 %v1506_v58 }
 0x585   : > { %v2644_v45 = vpop.eup %2643 }
 0x586   : > { %v1561_v2 = vmul.f32 %v2644_v45, %v3267_v49 }
 0x587   : > { %v1509_v60 = vpop.xlane.xlu1 %1508 }
 0x588   : > { %2651 = vrcp.f32 %v1509_v60  ;;  %v1578_v4 = vpack.c.bf16 %v1561_v2, %v1560_v11 }
 0x589   : > { %v2646_v30 = vpop.eup %2645 }
 0x58a   : > { %2541 = vmatmul.mubr.msk.bf16.gmra.mxu1 %vm1377_vm6, %v1578_v4  ;;  %v1562_v9 = vmul.f32 %v2646_v30, %v3272_v63 }
 0x58b   : > { %v1512_v53 = vpop.xlane.xlu0 %1511  ;;  %2544 = vmatprep.mubr.msk.bf16.mxu1 %vm2682_vm2, %v3547_v52 }
 0x58c   : > { %2653 = vrcp.f32 %v1512_v53 }
 0x58d   : > { %v2648_v42 = vpop.eup %2647 }
 0x58e   : > { %v1563_v0 = vmul.f32 %v2648_v42, %v3277_v10 }
 0x58f   : > { %v1515_v51 = vpop.xlane.xlu1 %1514 }
 0x590   : > { %2655 = vrcp.f32 %v1515_v51  ;;  %v1579_v59 = vpack.c.bf16 %v1563_v0, %v1562_v9 }
 0x591   : > { %v2650_v49 = vpop.eup %2649 }
 0x592   : > { %2545 = vmatmul.mubr.msk.bf16.gmra.mxu1 %vm1377_vm6, %v1579_v59  ;;  %v1564_v58 = vmul.f32 %v2650_v49, %v3282_v32 }
 0x593   : > { %v1518_v31 = vpop.xlane.xlu0 %1517  ;;  %2548 = vmatprep.mubr.msk.bf16.mxu1 %vm2682_vm2, %v3547_v52 }
 0x594   : > { %2657 = vrcp.f32 %v1518_v31 }
 0x595   : > { %v2652_v7 = vpop.eup %2651 }
 0x596   : > { %v1565_v45 = vmul.f32 %v2652_v7, %v3287_v56 }
 0x597   : > { %v1521_v11 = vpop.xlane.xlu1 %1520 }
 0x598   : > { %2659 = vrcp.f32 %v1521_v11  ;;  %v1580_v63 = vpack.c.bf16 %v1565_v45, %v1564_v58 }
 0x599   : > { %v2654_v10 = vpop.eup %2653 }
 0x59a   : > { %2549 = vmatmul.mubr.msk.bf16.gmra.mxu1 %vm1377_vm6, %v1580_v63  ;;  %v1566_v4 = vmul.f32 %v2654_v10, %v3292_v37 }
 0x59b   : > { %v1524_v2 = vpop.xlane.xlu0 %1523  ;;  %2552 = vmatprep.mubr.msk.bf16.mxu1 %vm2682_vm2, %v3547_v52 }
 0x59c   : > { %2661 = vrcp.f32 %v1524_v2 }
 0x59d   : > { %v2656_v60 = vpop.eup %2655 }
 0x59e   : > { %v1567_v30 = vmul.f32 %v2656_v60, %v3297_v1 }
 0x59f   : > { %v1527_v53 = vpop.xlane.xlu1 %1526 }
 0x5a0   : > { %2663 = vrcp.f32 %v1527_v53  ;;  %v1581_v32 = vpack.c.bf16 %v1567_v30, %v1566_v4  ;;  %v2683_v53 = vmov 0  }
 0x5a1   : > { %v2658_v56 = vpop.eup %2657  ;;  %1831 = vmatprep.mubr.bf16.mxu0 %v2683_v53 }
 0x5a2   : > { %2553 = vmatmul.mubr.msk.bf16.gmra.mxu1 %vm1377_vm6, %v1581_v32  ;;  %v1568_v0 = vmul.f32 %v2658_v56, %v3302_v35 }
 0x5a3   : > { %v1530_v42 = vpop.xlane.xlu0 %1529  ;;  %2556 = vmatprep.mubr.msk.bf16.mxu1 %vm2682_vm2, %v3547_v52 }
 0x5a4   : > { %2665 = vrcp.f32 %v1530_v42 }
 0x5a5   : > { %v2660_v9 = vpop.eup %2659 }
 0x5a6   : > { %v1569_v51 = vmul.f32 %v2660_v9, %v3307_v57 }
 0x5a7   : > { %v1533_v59 = vpop.xlane.xlu1 %1532 }
 0x5a8   : > { %2667 = vrcp.f32 %v1533_v59  ;;  %v1582_v37 = vpack.c.bf16 %v1569_v51, %v1568_v0 }
 0x5a9   : > { %v2662_v1 = vpop.eup %2661 }
 0x5aa   : > { %2557 = vmatmul.mubr.msk.bf16.gmra.mxu1 %vm1377_vm6, %v1582_v37  ;;  %v1570_v7 = vmul.f32 %v2662_v1, %v3312_v3 }
 0x5ab   : > { %v1536_v49 = vpop.xlane.xlu0 %1535  ;;  %2560 = vmatprep.mubr.msk.bf16.mxu1 %vm2682_vm2, %v3547_v52 }
 0x5ac   : > { %2669 = vrcp.f32 %v1536_v49 }
 0x5ad   : > { %v2664_v31 = vpop.eup %2663 }
 0x5ae   : > { %v1571_v58 = vmul.f32 %v2664_v31, %v3317_v27 }
 0x5af   : > { %v1539_v45 = vpop.xlane.xlu1 %1538 }
 0x5b0   : > { %2671 = vrcp.f32 %v1539_v45  ;;  %v1583_v35 = vpack.c.bf16 %v1571_v58, %v1570_v7 }
 0x5b1   : > { %v2666_v57 = vpop.eup %2665 }
 0x5b2   : > { %2561 = vmatmul.mubr.msk.bf16.gmra.mxu1 %vm1377_vm6, %v1583_v35  ;;  %v1572_v63 = vmul.f32 %v2666_v57, %v3321_v8  ;;  %v2600_v8 = vld [vmem:[%s3541_s9 + $0x4] ss:$8 sps:$4 sm:$0xff]  }
 0x5b3   : > { %2564 = vmatprep.mubr.msk.bf16.mxu1 %vm2682_vm2, %v3547_v52  ;;  %1813 = vmatprep.subr.bf16.mxu0 %v2600_v8 }
 0x5b5   : > { %v2668_v11 = vpop.eup %2667 }
 0x5b6   : > { %v1573_v10 = vmul.f32 %v2668_v11, %v3325_v44  ;;  %v2598_v44 = vld [vmem:[%s3541_s9] ss:$8 sps:$4 sm:$0xff]  }
 0x5b7   : > { %1814 = vmatpush1.bf16.msra.mxu0 %v2598_v44 }
 0x5b8   : > { %v1584_v2 = vpack.c.bf16 %v1573_v10, %v1572_v63 }
 0x5b9   : > { %v2670_v3 = vpop.eup %2669 }
 0x5ba   : > { %2565 = vmatmul.mubr.msk.bf16.gmra.mxu1 %vm1377_vm6, %v1584_v2  ;;  %v1574_v60 = vmul.f32 %v2670_v3, %v3329_v43 }
 0x5bb   : > { %2568 = vmatprep.mubr.msk.bf16.mxu1 %vm2682_vm2, %v3547_v52 }
 0x5bd   : > { %v2672_v27 = vpop.eup %2671 }
 0x5be   : > { %v1575_v4 = vmul.f32 %v2672_v27, %v3333_v36 }
 0x5c0   : > { %v1585_v30 = vpack.c.bf16 %v1575_v4, %v1574_v60 }
 0x5c2   : > { %2569 = vmatmul.mubr.msk.bf16.gmra.mxu1 %vm1377_vm6, %v1585_v30 }
 0x642   : > { %v1650_v52 = vpop.f32.mrf.mxu1 }
 0x643   : > { %v1721_v36 = vadd.f32 %v1650_v52, %v3048_v33 }
 0x644   : > { %v2538_v43 = vpop.f32.mrf.mxu1 }
 0x646   : > { %v1653_v32 = vpop.f32.mrf.mxu1 }
 0x647   : > { %v1722_v56 = vadd.f32 %v1653_v32, %v3051_v34 }
 0x648   : > { %v2539_v42 = vpop.f32.mrf.mxu1 }
 0x649   : > { %v1743_v9 = vpack.c.bf16 %v1722_v56, %v1721_v36 }
 0x64a   : > { %v1658_v0 = vpop.f32.mrf.mxu1 }
 0x64b   : > { %2283 = vmatmul.mubr.msk.bf16.vlgmr.msra.gmra.mxu0 %vm1081_vm5, %v1743_v9  ;;  %v1723_v37 = vadd.f32 %v1658_v0, %v3059_v40 }
 0x64c   : > { %v2542_v51 = vpop.f32.mrf.mxu1  ;;  %1841 = vmatprep.mubr.bf16.mxu0 %v2683_v53 }
 0x64e   : > { %v1661_v59 = vpop.f32.mrf.mxu1 }
 0x64f   : > { %v1724_v1 = vadd.f32 %v1661_v59, %v3062_v41 }
 0x650   : > { %v2543_v49 = vpop.f32.mrf.mxu1 }
 0x651   : > { %v1744_v31 = vpack.c.bf16 %v1724_v1, %v1723_v37 }
 0x652   : > { %v1666_v7 = vpop.f32.mrf.mxu1 }
 0x653   : > { %2284 = vmatmul.mubr.msk.bf16.gmra.mxu0 %vm1081_vm5, %v1744_v31  ;;  %v1725_v58 = vadd.f32 %v1666_v7, %v3070_v47 }
 0x654   : > { %v2546_v33 = vpop.f32.mrf.mxu1  ;;  %1851 = vmatprep.mubr.bf16.mxu0 %v2683_v53 }
 0x656   : > { %v1669_v34 = vpop.f32.mrf.mxu1 }
 0x657   : > { %v1726_v45 = vadd.f32 %v1669_v34, %v3073_v48 }
 0x658   : > { %v2547_v35 = vpop.f32.mrf.mxu1 }
 0x659   : > { %v1745_v57 = vpack.c.bf16 %v1726_v45, %v1725_v58 }
 0x65a   : > { %v1674_v11 = vpop.f32.mrf.mxu1 }
 0x65b   : > { %2285 = vmatmul.mubr.msk.bf16.gmra.mxu0 %vm1081_vm5, %v1745_v57  ;;  %v1727_v63 = vadd.f32 %v1674_v11, %v3081_v54 }
 0x65c   : > { %v2550_v40 = vpop.f32.mrf.mxu1  ;;  %1861 = vmatprep.mubr.bf16.mxu0 %v2683_v53 }
 0x65e   : > { %v1677_v41 = vpop.f32.mrf.mxu1 }
 0x65f   : > { %v1728_v10 = vadd.f32 %v1677_v41, %v3084_v55 }
 0x660   : > { %v2551_v2 = vpop.f32.mrf.mxu1 }
 0x661   : > { %v1746_v3 = vpack.c.bf16 %v1728_v10, %v1727_v63 }
 0x662   : > { %v1682_v27 = vpop.f32.mrf.mxu1 }
 0x663   : > { %2286 = vmatmul.mubr.msk.bf16.gmra.mxu0 %vm1081_vm5, %v1746_v3  ;;  %v1729_v60 = vadd.f32 %v1682_v27, %v3092_v61 }
 0x664   : > { %v2554_v47 = vpop.f32.mrf.mxu1  ;;  %1871 = vmatprep.mubr.bf16.mxu0 %v2683_v53 }
 0x666   : > { %v1685_v48 = vpop.f32.mrf.mxu1 }
 0x667   : > { %v1730_v4 = vadd.f32 %v1685_v48, %v3095_v62 }
 0x668   : > { %v2555_v30 = vpop.f32.mrf.mxu1 }
 0x669   : > { %v1747_v8 = vpack.c.bf16 %v1730_v4, %v1729_v60 }
 0x66a   : > { %v1690_v44 = vpop.f32.mrf.mxu1 }
 0x66b   : > { %2287 = vmatmul.mubr.msk.bf16.gmra.mxu0 %vm1081_vm5, %v1747_v8  ;;  %v1731_v52 = vadd.f32 %v1690_v44, %v3103_v5 }
 0x66c   : > { %v2558_v54 = vpop.f32.mrf.mxu1  ;;  %1881 = vmatprep.mubr.bf16.mxu0 %v2683_v53 }
 0x66e   : > { %v1693_v55 = vpop.f32.mrf.mxu1 }
 0x66f   : > { %v1732_v43 = vadd.f32 %v1693_v55, %v3106_v6 }
 0x670   : > { %v2559_v32 = vpop.f32.mrf.mxu1 }
 0x671   : > { %v1748_v36 = vpack.c.bf16 %v1732_v43, %v1731_v52 }
 0x672   : > { %v1698_v56 = vpop.f32.mrf.mxu1 }
 0x673   : > { %2288 = vmatmul.mubr.msk.bf16.gmra.mxu0 %vm1081_vm5, %v1748_v36  ;;  %v1733_v42 = vadd.f32 %v1698_v56, %v3114_v28 }
 0x674   : > { %v2562_v61 = vpop.f32.mrf.mxu1  ;;  %1891 = vmatprep.mubr.bf16.mxu0 %v2683_v53 }
 0x676   : > { %v1701_v62 = vpop.f32.mrf.mxu1 }
 0x677   : > { %v1734_v9 = vadd.f32 %v1701_v62, %v3117_v29 }
 0x678   : > { %v2563_v0 = vpop.f32.mrf.mxu1 }
 0x679   : > { %v1749_v51 = vpack.c.bf16 %v1734_v9, %v1733_v42 }
 0x67a   : > { %v1706_v59 = vpop.f32.mrf.mxu1 }
 0x67b   : > { %2289 = vmatmul.mubr.msk.bf16.gmra.mxu0 %vm1081_vm5, %v1749_v51  ;;  %v1735_v37 = vadd.f32 %v1706_v59, %v3125_v38  ;;  %v1923_v38 = vld [vmem:[%s3537_s5 + $0x8] sm:$0xff] }
 0x67c   : > { %v2566_v5 = vpop.f32.mrf.mxu1  ;;  %1901 = vmatprep.mubr.bf16.mxu0 %v2683_v53  ;;  %2292 = vmatprep.mubr.msk.f32.mxu1 %vm1938_vm7, %v1923_v38  ;;  %v1934_v38 = vld [vmem:[%s3537_s5 + $0x60] sm:$0xff] }
 0x67e   : > { %v1709_v6 = vpop.f32.mrf.mxu1 }
 0x67f   : > { %v1736_v1 = vadd.f32 %v1709_v6, %v3128_v39  ;;  %v1922_v6 = vld [vmem:[%s3537_s5] sm:$0xff] }
 0x680   : > { %v2567_v49 = vpop.f32.mrf.mxu1 }
 0x681   : > { %v1750_v31 = vpack.c.bf16 %v1736_v1, %v1735_v37  ;;  %v1925_v37 = vld [vmem:[%s3537_s5 + $0x18] sm:$0xff]  ;;  %v1924_v1 = vld [vmem:[%s3537_s5 + $0x10] sm:$0xff]  ;;  %v1927_v49 = vld [vmem:[%s3537_s5 + $0x28] sm:$0xff] }
 0x682   : > { %v1714_v7 = vpop.f32.mrf.mxu1 }
 0x683   : > { %2290 = vmatmul.mubr.msk.bf16.gmra.mxu0 %vm1081_vm5, %v1750_v31  ;;  %v1737_v33 = vadd.f32 %v1714_v7, %v3136_v46  ;;  %v1926_v31 = vld [vmem:[%s3537_s5 + $0x20] sm:$0xff]  ;;  %v1929_v7 = vld [vmem:[%s3537_s5 + $0x38] sm:$0xff] }
 0x684   : > { %v2570_v28 = vpop.f32.mrf.mxu1  ;;  %1911 = vmatprep.mubr.bf16.mxu0 %v2683_v53 }
 0x685   : > { %v1928_v28 = vld [vmem:[%s3537_s5 + $0x30] sm:$0xff] }
 0x686   : > { %v1717_v29 = vpop.f32.mrf.mxu1 }
 0x687   : > { %v1738_v34 = vadd.f32 %v1717_v29, %v3139_v50  ;;  %v1931_v29 = vld [vmem:[%s3537_s5 + $0x48] sm:$0xff] }
 0x688   : > { %v2571_v58 = vpop.f32.mrf.mxu1 }
 0x689   : > { %v1751_v45 = vpack.c.bf16 %v1738_v34, %v1737_v33  ;;  %v1930_v33 = vld [vmem:[%s3537_s5 + $0x40] sm:$0xff]  ;;  %v1933_v34 = vld [vmem:[%s3537_s5 + $0x58] sm:$0xff]  ;;  %v1932_v58 = vld [vmem:[%s3537_s5 + $0x50] sm:$0xff] }
 0x68b   : > { %2291 = vmatmul.mubr.msk.bf16.gmra.mxu0 %vm1081_vm5, %v1751_v45  ;;  %v1935_v45 = vld [vmem:[%s3537_s5 + $0x68] sm:$0xff] }
 0x70b   : > { %v3432_v39 = vpop.f32.mrf.mxu0 }
 0x70d   : > { %v3434_v35 = vpop.f32.mrf.mxu0 }
 0x70f   : > { %v1837_v53 = vpop.f32.mrf.mxu0 }
 0x711   : > { %v1839_v57 = vpop.f32.mrf.mxu0 }
 0x713   : > { %v1843_v46 = vpop.f32.mrf.mxu0 }
 0x715   : > { %v1845_v11 = vpop.f32.mrf.mxu0 }
 0x717   : > { %v1847_v50 = vpop.f32.mrf.mxu0 }
 0x719   : > { %v1849_v40 = vpop.f32.mrf.mxu0 }
 0x71b   : > { %v1853_v41 = vpop.f32.mrf.mxu0 }
 0x71d   : > { %v1855_v63 = vpop.f32.mrf.mxu0 }
 0x71f   : > { %v1857_v10 = vpop.f32.mrf.mxu0 }
 0x721   : > { %v1859_v2 = vpop.f32.mrf.mxu0 }
 0x723   : > { %v1863_v3 = vpop.f32.mrf.mxu0 }
 0x725   : > { %v1865_v27 = vpop.f32.mrf.mxu0 }
 0x727   : > { %v1867_v47 = vpop.f32.mrf.mxu0 }
 0x729   : > { %v1869_v48 = vpop.f32.mrf.mxu0 }
 0x72b   : > { %v1873_v60 = vpop.f32.mrf.mxu0 }
 0x72d   : > { %v1875_v4 = vpop.f32.mrf.mxu0 }
 0x72f   : > { %v1877_v30 = vpop.f32.mrf.mxu0 }
 0x731   : > { %v1879_v8 = vpop.f32.mrf.mxu0 }
 0x733   : > { %v1883_v44 = vpop.f32.mrf.mxu0 }
 0x735   : > { %v1885_v54 = vpop.f32.mrf.mxu0 }
 0x737   : > { %v1887_v55 = vpop.f32.mrf.mxu0 }
 0x739   : > { %v1889_v52 = vpop.f32.mrf.mxu0 }
 0x73b   : > { %v1893_v43 = vpop.f32.mrf.mxu0 }
 0x73d   : > { %v1895_v32 = vpop.f32.mrf.mxu0 }
 0x73f   : > { %v1897_v36 = vpop.f32.mrf.mxu0 }
 0x741   : > { %v1899_v56 = vpop.f32.mrf.mxu0 }
 0x743   : > { %v1903_v61 = vpop.f32.mrf.mxu0 }
 0x745   : > { %v1905_v62 = vpop.f32.mrf.mxu0 }
 0x747   : > { %v1907_v42 = vpop.f32.mrf.mxu0 }
 0x749   : > { %v1909_v9 = vpop.f32.mrf.mxu0 }
 0x74a   : > { %1963 = vmatprep.subr.mxu1 %v1909_v9 }
 0x74b   : > { %1964 = vmatpush1.msra.mxu1 %v1907_v42  ;;  %v1913_v0 = vpop.f32.mrf.mxu0 }
 0x74c   : > { %1965 = vmatprep.subr.mxu1 %v1905_v62 }
 0x74d   : > { %1966 = vmatpush1.msra.mxu1 %v1903_v61  ;;  %v1915_v51 = vpop.f32.mrf.mxu0 }
 0x74e   : > { %1967 = vmatprep.subr.mxu1 %v1899_v56 }
 0x74f   : > { %1968 = vmatpush1.msra.mxu1 %v1897_v36  ;;  %v1917_v59 = vpop.f32.mrf.mxu0 }
 0x750   : > { %1969 = vmatprep.subr.mxu1 %v1895_v32 }
 0x751   : > { %1970 = vmatpush1.msra.mxu1 %v1893_v43  ;;  %v1919_v5 = vpop.f32.mrf.mxu0 }
 0x752   : > { %1971 = vmatprep.subr.mxu1 %v1889_v52 }
 0x753   : > { %1972 = vmatpush1.msra.mxu1 %v1887_v55 }
 0x754   : > { %1973 = vmatprep.subr.mxu1 %v1885_v54 }
 0x755   : > { %1974 = vmatpush1.msra.mxu1 %v1883_v44 }
 0x756   : > { %1975 = vmatprep.subr.mxu1 %v1879_v8 }
 0x757   : > { %1976 = vmatpush1.msra.mxu1 %v1877_v30 }
 0x758   : > { %1977 = vmatprep.subr.mxu1 %v1875_v4 }
 0x759   : > { %1978 = vmatpush1.msra.mxu1 %v1873_v60 }
 0x75a   : > { %1979 = vmatprep.subr.mxu1 %v1869_v48 }
 0x75b   : > { %1980 = vmatpush1.msra.mxu1 %v1867_v47 }
 0x75c   : > { %1981 = vmatprep.subr.mxu1 %v1865_v27 }
 0x75d   : > { %1982 = vmatpush1.msra.mxu1 %v1863_v3 }
 0x75e   : > { %1983 = vmatprep.subr.mxu1 %v1859_v2 }
 0x75f   : > { %1984 = vmatpush1.msra.mxu1 %v1857_v10 }
 0x760   : > { %1985 = vmatprep.subr.mxu1 %v1855_v63 }
 0x761   : > { %1986 = vmatpush1.msra.mxu1 %v1853_v41 }
 0x762   : > { %1987 = vmatprep.subr.mxu1 %v1849_v40 }
 0x763   : > { %1988 = vmatpush1.msra.mxu1 %v1847_v50 }
 0x764   : > { %1989 = vmatprep.subr.mxu1 %v1845_v11 }
 0x765   : > { %1990 = vmatpush1.msra.mxu1 %v1843_v46 }
 0x766   : > { %1991 = vmatprep.subr.mxu1 %v1839_v57 }
 0x767   : > { %1992 = vmatpush1.msra.mxu1 %v1837_v53 }
 0x768   : > { %1993 = vmatprep.subr.mxu1 %v3434_v35  ;;  %v1936_v35 = vld [vmem:[%s3537_s5 + $0x70] sm:$0xff] }
 0x769   : > { %1994 = vmatpush1.msra.mxu1 %v3432_v39  ;;  %v1937_v39 = vld [vmem:[%s3537_s5 + $0x78] sm:$0xff] }
 0x76a   : > { %2023 = vmatprep.subr.mxu1 %v1919_v5 }
 0x76b   : > { %2024 = vmatpush2.msra.mxu1 %v1917_v59 }
 0x76c   : > { %2025 = vmatprep.subr.mxu1 %v1915_v51 }
 0x76d   : > { %2026 = vmatpush2.msra.mxu1 %v1913_v0 }
 0x76e   : > { %2028 = vmatmul.mubr.f32.vlgmr.msra.gmra.mxu1 %v1922_v6  ;;  %v3548_v6 = vld [vmem:[#allocation2_spill] sm:$0xff] }
 0x76f   : > { %2293 = vmatprep.mubr.msk.f32.mxu1 %vm1938_vm7, %v1925_v37 }
 0x772   : > { %2034 = vmatmul.mubr.f32.gmra.mxu1 %v1924_v1 }
 0x773   : > { %2294 = vmatprep.mubr.msk.f32.mxu1 %vm1938_vm7, %v1927_v49 }
 0x776   : > { %2040 = vmatmul.mubr.f32.gmra.mxu1 %v1926_v31 }
 0x777   : > { %2295 = vmatprep.mubr.msk.f32.mxu1 %vm1938_vm7, %v1929_v7 }
 0x77a   : > { %2046 = vmatmul.mubr.f32.gmra.mxu1 %v1928_v28 }
 0x77b   : > { %2296 = vmatprep.mubr.msk.f32.mxu1 %vm1938_vm7, %v1931_v29 }
 0x77e   : > { %2052 = vmatmul.mubr.f32.gmra.mxu1 %v1930_v33 }
 0x77f   : > { %2297 = vmatprep.mubr.msk.f32.mxu1 %vm1938_vm7, %v1933_v34 }
 0x782   : > { %2058 = vmatmul.mubr.f32.gmra.mxu1 %v1932_v58 }
 0x783   : > { %2298 = vmatprep.mubr.msk.f32.mxu1 %vm1938_vm7, %v1935_v45 }
 0x786   : > { %2064 = vmatmul.mubr.f32.gmra.mxu1 %v1934_v38 }
 0x787   : > { %2299 = vmatprep.mubr.msk.f32.mxu1 %vm1938_vm7, %v1937_v39 }
 0x78a   : > { %2070 = vmatmul.mubr.f32.gmra.mxu1 %v1936_v35 }
 0x82e   : > { %v2029_v53 = vpop.f32.mrf.mxu1 }
 0x82f   : > { %v2076_v57 = vsub.f32 %v2975_v12, %v2029_v53 }
 0x830   : > { %v2031_v46 = vpop.f32.mrf.mxu1 }
 0x831   : > { %v2300_v11 = vclamps-f32 %v2076_v57, 1.0  ;;  %v2077_v50 = vsub.f32 %v2977_v13, %v2031_v46 }
 0x832   : > { %v2035_v40 = vpop.f32.mrf.mxu1 }
 0x833   : > { %2124 = vst [vmem:[%s3496_s16] sm:$0xff] %v2300_v11  ;;  %v2301_v41 = vclamps-f32 %v2077_v50, 1.0  ;;  %v2078_v12 = vsub.f32 %v2979_v14, %v2035_v40 }
 0x834   : > { %v2037_v63 = vpop.f32.mrf.mxu1 }
 0x835   : > { %2125 = vst [vmem:[%s3496_s16 + $0x8] sm:$0xff] %v2301_v41  ;;  %v2302_v10 = vclamps-f32 %v2078_v12, 1.0  ;;  %v2079_v2 = vsub.f32 %v2981_v15, %v2037_v63 }
 0x836   : > { %v2041_v3 = vpop.f32.mrf.mxu1 }
 0x837   : > { %2126 = vst [vmem:[%s3496_s16 + $0x10] sm:$0xff] %v2302_v10  ;;  %v2303_v27 = vclamps-f32 %v2079_v2, 1.0  ;;  %v2080_v47 = vsub.f32 %v2983_v16, %v2041_v3 }
 0x838   : > { %v2043_v48 = vpop.f32.mrf.mxu1 }
 0x839   : > { %2127 = vst [vmem:[%s3496_s16 + $0x18] sm:$0xff] %v2303_v27  ;;  %v2304_v13 = vclamps-f32 %v2080_v47, 1.0  ;;  %v2081_v60 = vsub.f32 %v2985_v17, %v2043_v48 }
 0x83a   : > { %v2047_v4 = vpop.f32.mrf.mxu1 }
 0x83b   : > { %2128 = vst [vmem:[%s3496_s16 + $0x20] sm:$0xff] %v2304_v13  ;;  %v2305_v14 = vclamps-f32 %v2081_v60, 1.0  ;;  %v2082_v30 = vsub.f32 %v2987_v18, %v2047_v4 }
 0x83c   : > { %v2049_v8 = vpop.f32.mrf.mxu1 }
 0x83d   : > { %2129 = vst [vmem:[%s3496_s16 + $0x28] sm:$0xff] %v2305_v14  ;;  %v2306_v15 = vclamps-f32 %v2082_v30, 1.0  ;;  %v2083_v44 = vsub.f32 %v2989_v19, %v2049_v8 }
 0x83e   : > { %v2053_v54 = vpop.f32.mrf.mxu1 }
 0x83f   : > { %2130 = vst [vmem:[%s3496_s16 + $0x30] sm:$0xff] %v2306_v15  ;;  %v2307_v16 = vclamps-f32 %v2083_v44, 1.0  ;;  %v2084_v55 = vsub.f32 %v2991_v20, %v2053_v54 }
 0x840   : > { %v2055_v52 = vpop.f32.mrf.mxu1 }
 0x841   : > { %2131 = vst [vmem:[%s3496_s16 + $0x38] sm:$0xff] %v2307_v16  ;;  %v2308_v17 = vclamps-f32 %v2084_v55, 1.0  ;;  %v2085_v43 = vsub.f32 %v2993_v21, %v2055_v52 }
 0x842   : > { %v2059_v32 = vpop.f32.mrf.mxu1 }
 0x843   : > { %2132 = vst [vmem:[%s3496_s16 + $0x40] sm:$0xff] %v2308_v17  ;;  %v2309_v18 = vclamps-f32 %v2085_v43, 1.0  ;;  %v2086_v36 = vsub.f32 %v2995_v22, %v2059_v32 }
 0x844   : > { %v2061_v56 = vpop.f32.mrf.mxu1 }
 0x845   : > { %2133 = vst [vmem:[%s3496_s16 + $0x48] sm:$0xff] %v2309_v18  ;;  %v2310_v19 = vclamps-f32 %v2086_v36, 1.0  ;;  %v2087_v61 = vsub.f32 %v2997_v23, %v2061_v56 }
 0x846   : > { %v2065_v62 = vpop.f32.mrf.mxu1 }
 0x847   : > { %2134 = vst [vmem:[%s3496_s16 + $0x50] sm:$0xff] %v2310_v19  ;;  %v2311_v20 = vclamps-f32 %v2087_v61, 1.0  ;;  %v2088_v42 = vsub.f32 %v2999_v24, %v2065_v62 }
 0x848   : > { %v2067_v21 = vpop.f32.mrf.mxu1 }
 0x849   : > { %2135 = vst [vmem:[%s3496_s16 + $0x58] sm:$0xff] %v2311_v20  ;;  %v2312_v9 = vclamps-f32 %v2088_v42, 1.0  ;;  %v2089_v0 = vsub.f32 %v3001_v25, %v2067_v21 }
 0x84a   : > { %v2071_v51 = vpop.f32.mrf.mxu1 }
 0x84b   : > { %2136 = vst [vmem:[%s3496_s16 + $0x60] sm:$0xff] %v2312_v9  ;;  %v2313_v22 = vclamps-f32 %v2089_v0, 1.0  ;;  %v2090_v59 = vsub.f32 %v3003_v26, %v2071_v51 }
 0x84c   : > { %v2073_v5 = vpop.f32.mrf.mxu1 }
 0x84d   : > { %2137 = vst [vmem:[%s3496_s16 + $0x68] sm:$0xff] %v2313_v22  ;;  %v2314_v23 = vclamps-f32 %v2090_v59, 1.0  ;;  %v2091_v37 = vsub.f32 %v3548_v6, %v2073_v5 }
 0x84f   : > { %2138 = vst [vmem:[%s3496_s16 + $0x70] sm:$0xff] %v2314_v23  ;;  %v2315_v1 = vclamps-f32 %v2091_v37, 1.0 }
 0x851   : > { %2139 = vst [vmem:[%s3496_s16 + $0x78] sm:$0xff] %v2315_v1 }
 0x852 PF: > { %s21_s17 = sadd.s32 1, %s2679_s17  }
 0x853   : > { %p18_p4 = scmp.ge.s32.totalorder %s21_s17, 4  }
 0x855   :  { %20 = sbr.rel (!%p18_p4) target bundleno = 1 (0x1), region = 94 }

</bundles_post_ra>
